<compile_context>
chip_gen: v7x
topology: tpu7x:2x2x1
jax: 0.10.0
libtpu: 0.0.40
codegen_flags: <defaults>
</compile_context>

<pallas_src>
import jax
import jax.numpy as jnp
from jax.experimental import pallas as pl
from jax.experimental.pallas import tpu as pltpu


def decoder_step_kernel(
    # batch-tiled data
    emb_ref, hid_ref, enc_ref,
    # attention params (resident in VMEM across the grid)
    wh_att_ref, we_att_ref, b_att_ref, v_att_ref,
    # GRU params, gate-split along a leading (r, z, n) axis
    w_ih_emb3_ref, w_ih_ctx3_ref, w_hh3_ref, b_i3_ref, b_h3_ref,
    # fc_out params, input-split (h / ctx / emb)
    fc_w_h_ref, fc_w_ctx_ref, fc_w_emb_ref, fc_b_ref,
    # outputs
    pred_ref, new_hid_ref,
):
    emb = emb_ref[...]                               # [tB, emb]   f32
    hidden = hid_ref[...]                            # [tB, H]     f32
    # enc streams from HBM as bf16 (half the bytes of the only large input);
    # upcast once in VMEM -- v5e's VPU/EUP have no bf16 elementwise.
    enc = enc_ref[...].astype(jnp.float32)           # [tB, S, E2]
    tB, S, E2 = enc.shape
    H = hidden.shape[-1]

    def _sigmoid(x):
        # 0.5*(tanh(0.5x)+1): single EUP op in an otherwise-free slot,
        # no exp + Newton-divide burning VALU slots.
        return 0.5 * (jnp.tanh(0.5 * x) + 1.0)

    # ---------------- additive (Bahdanau) attention ----------------
    # hidden part + bias hoisted once per tile: [tB, H]
    hb = jnp.dot(hidden, wh_att_ref[...],
                 preferred_element_type=jnp.float32) + b_att_ref[...]
    # encoder part as one flattened MXU matmul: [tB*S, E2] @ [E2, H]
    e2d = jnp.dot(enc.reshape(tB * S, E2), we_att_ref[...],
                  preferred_element_type=jnp.float32)
    energy = jnp.tanh(e2d.reshape(tB, S, H) + hb[:, None, :])          # [tB, S, H]
    # v-projection on VPU (mul) + XLU lane reduce instead of an N=1 matmul
    scores = jnp.sum(energy * v_att_ref[...][None, :, :], axis=-1)     # [tB, S]

    # single-pass softmax over src_len (S is the lane axis of scores)
    m = jnp.max(scores, axis=-1, keepdims=True)                        # [tB, 1]
    p = jnp.exp(scores - m)
    denom = jnp.sum(p, axis=-1, keepdims=True)
    a = p * pl.reciprocal(denom, approx=True)                          # [tB, S]

    # ---------------- weighted context ----------------
    # weighted[b, e] = sum_s a[b, s] * enc[b, s, e]   (VPU mul + sublane reduce)
    # TODO(synk): for production tile_b (>=256) and long S, chunk the S axis with
    # a lax.fori_loop(unroll=True) accumulation to cap live temporaries / spills.
    weighted = jnp.sum(a[:, :, None] * enc, axis=1)                    # [tB, E2]

    # ---------------- single-step GRU (PyTorch gate order r, z, n) ----------------
    # Weights are gate-split on a leading axis in the wrapper, so every slice here
    # is on the (free) leading axis -- no lane-offset slicing at 0/H/2H.
    def gi(g):
        return (jnp.dot(emb, w_ih_emb3_ref[g], preferred_element_type=jnp.float32)
                + jnp.dot(weighted, w_ih_ctx3_ref[g], preferred_element_type=jnp.float32)
                + b_i3_ref[g])

    def gh(g):
        return (jnp.dot(hidden, w_hh3_ref[g], preferred_element_type=jnp.float32)
                + b_h3_ref[g])

    r = _sigmoid(gi(0) + gh(0))
    z = _sigmoid(gi(1) + gh(1))
    n = jnp.tanh(gi(2) + r * gh(2))
    h_new = (1.0 - z) * n + z * hidden                                 # [tB, H]

    # ---------------- fc_out over cat(output, weighted, embedded) ----------------
    # TODO(synk): for production vocab sizes add a second lane-dense grid axis over
    # out_dim and stream fc_w_* blocks (instead of resident) to fit v7x's 64 MiB/TC.
    pred = (jnp.dot(h_new, fc_w_h_ref[...], preferred_element_type=jnp.float32)
            + jnp.dot(weighted, fc_w_ctx_ref[...], preferred_element_type=jnp.float32)
            + jnp.dot(emb, fc_w_emb_ref[...], preferred_element_type=jnp.float32)
            + fc_b_ref[...])                                           # [tB, out_dim]

    pred_ref[...] = pred
    new_hid_ref[...] = h_new


def _round_up(x, m):
    return ((x + m - 1) // m) * m


def prepare_encoder_outputs(encoder_outputs, dtype=jnp.bfloat16):
    """One-time batch-major re-layout [S,B,E2] -> [B,S,E2] + bf16 cast.

    In a real decode loop call this ONCE per source sentence and reuse it for
    every target token: the transpose/cast amortizes to ~zero and each per-tile
    enc DMA becomes one contiguous slab instead of S tiny strided chunks.
    """
    return jnp.transpose(encoder_outputs, (1, 0, 2)).astype(dtype)


def decoder_forward(input_ids, hidden, encoder_outputs, params, *,
                    tile_b=None, enc_prepared=None):
    """input_ids: [B] int32; hidden: [B, H]; encoder_outputs: [S, B, 2*enc_hid]."""
    B, H = hidden.shape
    f32 = jnp.float32
    if enc_prepared is None:
        enc_prepared = prepare_encoder_outputs(encoder_outputs)
    _, S, E2 = enc_prepared.shape
    emb_table = params["emb_table"]
    emb_dim = emb_table.shape[1]
    out_dim = params["fc_w"].shape[0]

    # Embedding gather done wrapper-side; dropout is identity at inference.
    # TODO(synk): training-mode dropout / in-kernel token gather not implemented.
    embedded = jnp.take(emb_table, input_ids, axis=0).astype(f32)      # [B, emb]

    # --- one-time weight layout plumbing (hoist once in a decode loop) ---
    attn_w, attn_b, v_w = params["attn_w"], params["attn_b"], params["v_w"]
    wh_att = jnp.asarray(attn_w[:, :H].T, f32)           # [H, H]   (hidden slice)
    we_att = jnp.asarray(attn_w[:, H:].T, f32)           # [E2, H]  (encoder slice)
    b_att = attn_b.reshape(1, H).astype(f32)
    v_att = v_w.reshape(1, H).astype(f32)

    gru_in = emb_dim + E2
    w_ih3 = params["w_ih"].reshape(3, H, gru_in).astype(f32)       # gates r, z, n
    w_ih_emb3 = jnp.transpose(w_ih3[:, :, :emb_dim], (0, 2, 1))    # [3, emb, H]
    w_ih_ctx3 = jnp.transpose(w_ih3[:, :, emb_dim:], (0, 2, 1))    # [3, E2, H]
    w_hh3 = jnp.transpose(params["w_hh"].reshape(3, H, H).astype(f32), (0, 2, 1))  # [3,H,H]
    b_i3 = params["b_ih"].reshape(3, 1, H).astype(f32)
    b_h3 = params["b_hh"].reshape(3, 1, H).astype(f32)

    fc_w, fc_b = params["fc_w"], params["fc_b"]
    fc_w_h = jnp.asarray(fc_w[:, :H].T, f32)              # [H, out_dim]
    fc_w_ctx = jnp.asarray(fc_w[:, H:H + E2].T, f32)      # [E2, out_dim]
    fc_w_emb = jnp.asarray(fc_w[:, H + E2:].T, f32)       # [emb, out_dim]
    fc_b2 = fc_b.reshape(1, out_dim).astype(f32)

    # --- batch tiling: largest tile that fits (single tile for the demo) ---
    if tile_b is None:
        tile_b = min(_round_up(B, 8), 256)   # cap keeps pred tile + buffers in VMEM
    tile_b = _round_up(tile_b, 8)
    n_tiles = pl.cdiv(B, tile_b)
    b_pad = n_tiles * tile_b
    if b_pad != B:
        pad = b_pad - B
        embedded = jnp.pad(embedded, ((0, pad), (0, 0)))
        hidden_p = jnp.pad(hidden, ((0, pad), (0, 0)))
        enc_prepared = jnp.pad(enc_prepared, ((0, pad), (0, 0), (0, 0)))
    else:
        hidden_p = hidden

    def _tile2d(last):
        return pl.BlockSpec((tile_b, last), lambda b: (b, 0))

    def _resident(arr):     # full array, constant block index -> stays in VMEM
        shp = arr.shape
        return pl.BlockSpec(shp, lambda b: (0,) * len(shp))
        # (pl.Buffered(1) pipeline_mode would halve resident-weight VMEM; skipped:
        #  negligible at these weight sizes.)

    weights = [wh_att, we_att, b_att, v_att,
               w_ih_emb3, w_ih_ctx3, w_hh3, b_i3, b_h3,
               fc_w_h, fc_w_ctx, fc_w_emb, fc_b2]

    in_specs = [
        _tile2d(emb_dim),                                      # embedded [B, emb]
        _tile2d(H),                                            # hidden   [B, H]
        pl.BlockSpec((tile_b, S, E2), lambda b: (b, 0, 0)),    # enc [B,S,E2] contiguous slab
    ] + [_resident(w) for w in weights]

    out_specs = (_tile2d(out_dim), _tile2d(H))
    out_shape = (jax.ShapeDtypeStruct((b_pad, out_dim), f32),
                 jax.ShapeDtypeStruct((b_pad, H), f32))

    pred, new_hid = pl.pallas_call(
        decoder_step_kernel,
        grid=(n_tiles,),
        in_specs=in_specs,
        out_specs=out_specs,
        out_shape=out_shape,
        compiler_params=pltpu.CompilerParams(
            # Megacore split on v7x; for production pick tile_b so n_tiles is an
            # even multiple of 2 there. At demo sizes one tile is cheapest.
            dimension_semantics=("parallel",)),
    )(embedded, hidden_p, enc_prepared, *weights)

    return pred[:B], new_hid[:B]


def decoder_reference(input_ids, hidden, encoder_outputs, p):
    """Pure-JAX mirror of the PyTorch Decoder.forward (eval mode), for checking."""
    S, B, E2 = encoder_outputs.shape
    H = hidden.shape[-1]
    emb = p["emb_table"][input_ids]                              # [B, emb]
    # attention
    h_rep = jnp.repeat(hidden[:, None, :], S, axis=1)            # [B, S, H]
    enc_b = jnp.transpose(encoder_outputs, (1, 0, 2))            # [B, S, E2]
    cat = jnp.concatenate([h_rep, enc_b], axis=2)
    energy = jnp.tanh(cat @ p["attn_w"].T + p["attn_b"])
    att = (energy @ p["v_w"].T)[..., 0]                          # [B, S]
    a = jax.nn.softmax(att, axis=1)
    weighted = jnp.einsum("bs,bsd->bd", a, enc_b)                # [B, E2]
    # single-step GRU (gate order r, z, n)
    x = jnp.concatenate([emb, weighted], axis=1)
    gi = x @ p["w_ih"].T + p["b_ih"]
    gh = hidden @ p["w_hh"].T + p["b_hh"]
    r = jax.nn.sigmoid(gi[:, :H] + gh[:, :H])
    z = jax.nn.sigmoid(gi[:, H:2 * H] + gh[:, H:2 * H])
    n = jnp.tanh(gi[:, 2 * H:] + r * gh[:, 2 * H:])
    h_new = (1.0 - z) * n + z * hidden
    pred = jnp.concatenate([h_new, weighted, emb], axis=1) @ p["fc_w"].T + p["fc_b"]
    return pred, h_new


if __name__ == "__main__":
    output_dim = 128        # vocab size; lane-dense (multiple of 128) fc_out output
    emb_dim = 8
    enc_hid_dim = 16
    dec_hid_dim = 32
    batch = 16
    src_len = 16
    E2 = 2 * enc_hid_dim

    key = jax.random.PRNGKey(0)
    ks = jax.random.split(key, 13)

    input_ids = jax.random.randint(ks[0], (batch,), 0, output_dim)
    hidden = jax.random.normal(ks[1], (batch, dec_hid_dim), jnp.float32)
    encoder_outputs = jax.random.normal(ks[2], (src_len, batch, E2), jnp.float32)

    def uni(k, shape, fan_in):
        b = 1.0 / (fan_in ** 0.5)
        return jax.random.uniform(k, shape, jnp.float32, -b, b)

    attn_in = E2 + dec_hid_dim
    gru_in = E2 + emb_dim
    fc_in = E2 + dec_hid_dim + emb_dim
    params = {
        "emb_table": jax.random.normal(ks[3], (output_dim, emb_dim), jnp.float32),
        "attn_w": uni(ks[4], (dec_hid_dim, attn_in), attn_in),
        "attn_b": uni(ks[5], (dec_hid_dim,), attn_in),
        "v_w": uni(ks[6], (1, dec_hid_dim), dec_hid_dim),
        "w_ih": uni(ks[7], (3 * dec_hid_dim, gru_in), dec_hid_dim),
        "w_hh": uni(ks[8], (3 * dec_hid_dim, dec_hid_dim), dec_hid_dim),
        "b_ih": uni(ks[9], (3 * dec_hid_dim,), dec_hid_dim),
        "b_hh": uni(ks[10], (3 * dec_hid_dim,), dec_hid_dim),
        "fc_w": uni(ks[11], (output_dim, fc_in), fc_in),
        "fc_b": uni(ks[12], (output_dim,), fc_in),
    }

    # One-time batch-major + bf16 re-layout of the encoder memory; in a real
    # decode loop this is computed once and reused for every target token.
    enc_prepared = prepare_encoder_outputs(encoder_outputs)

    pred, new_hid = decoder_forward(input_ids, hidden, encoder_outputs, params,
                                    enc_prepared=enc_prepared)
    pred, new_hid = jax.block_until_ready((pred, new_hid))

    ref_pred, ref_hid = decoder_reference(input_ids, hidden, encoder_outputs, params)

    assert pred.shape == (batch, output_dim)
    assert new_hid.shape == (batch, dec_hid_dim)
    # bf16 encoder stream + approx softmax reciprocal -> ~1e-2 tolerance.
    assert jnp.allclose(pred, ref_pred, atol=2e-2, rtol=2e-2), "prediction mismatch vs reference"
    assert jnp.allclose(new_hid, ref_hid, atol=2e-2, rtol=2e-2), "hidden mismatch vs reference"

    print("KERNEL_OK")
</pallas_src>

<mosaic_0001>
module attributes {stable_mosaic.version = 11 : i64} {
  func.func @decoder_step_kernel(%arg0: i32, %arg1: memref<16x8xf32, #tpu.memory_space<vmem>>, %arg2: memref<16x32xf32, #tpu.memory_space<vmem>>, %arg3: memref<16x16x32xbf16, #tpu.memory_space<vmem>>, %arg4: memref<32x32xf32, #tpu.memory_space<vmem>>, %arg5: memref<32x32xf32, #tpu.memory_space<vmem>>, %arg6: memref<1x32xf32, #tpu.memory_space<vmem>>, %arg7: memref<1x32xf32, #tpu.memory_space<vmem>>, %arg8: memref<3x8x32xf32, #tpu.memory_space<vmem>>, %arg9: memref<3x32x32xf32, #tpu.memory_space<vmem>>, %arg10: memref<3x32x32xf32, #tpu.memory_space<vmem>>, %arg11: memref<3x1x32xf32, #tpu.memory_space<vmem>>, %arg12: memref<3x1x32xf32, #tpu.memory_space<vmem>>, %arg13: memref<32x128xf32, #tpu.memory_space<vmem>>, %arg14: memref<32x128xf32, #tpu.memory_space<vmem>>, %arg15: memref<8x128xf32, #tpu.memory_space<vmem>>, %arg16: memref<1x128xf32, #tpu.memory_space<vmem>>, %arg17: memref<16x128xf32, #tpu.memory_space<vmem>>, %arg18: memref<16x32xf32, #tpu.memory_space<vmem>>) attributes {dimension_semantics = [#tpu.dimension_semantics<parallel>], iteration_bounds = array<i64: 1>, scalar_prefetch = 0 : i64, scratch_operands = 0 : i64, tpu.core_type = #tpu.core_type<tc>, window_params = [{transform_indices = @transform_0, window_bounds = array<i64: 16, 8>}, {transform_indices = @transform_1, window_bounds = array<i64: 16, 32>}, {transform_indices = @transform_2, window_bounds = array<i64: 16, 16, 32>}, {pipeline_mode = #tpu.pipeline_mode<synchronous>, transform_indices = @transform_3, window_bounds = array<i64: 32, 32>}, {pipeline_mode = #tpu.pipeline_mode<synchronous>, transform_indices = @transform_4, window_bounds = array<i64: 32, 32>}, {pipeline_mode = #tpu.pipeline_mode<synchronous>, transform_indices = @transform_5, window_bounds = array<i64: 1, 32>}, {pipeline_mode = #tpu.pipeline_mode<synchronous>, transform_indices = @transform_6, window_bounds = array<i64: 1, 32>}, {pipeline_mode = #tpu.pipeline_mode<synchronous>, transform_indices = @transform_7, window_bounds = array<i64: 3, 8, 32>}, {pipeline_mode = #tpu.pipeline_mode<synchronous>, transform_indices = @transform_8, window_bounds = array<i64: 3, 32, 32>}, {pipeline_mode = #tpu.pipeline_mode<synchronous>, transform_indices = @transform_9, window_bounds = array<i64: 3, 32, 32>}, {pipeline_mode = #tpu.pipeline_mode<synchronous>, transform_indices = @transform_10, window_bounds = array<i64: 3, 1, 32>}, {pipeline_mode = #tpu.pipeline_mode<synchronous>, transform_indices = @transform_11, window_bounds = array<i64: 3, 1, 32>}, {pipeline_mode = #tpu.pipeline_mode<synchronous>, transform_indices = @transform_12, window_bounds = array<i64: 32, 128>}, {pipeline_mode = #tpu.pipeline_mode<synchronous>, transform_indices = @transform_13, window_bounds = array<i64: 32, 128>}, {pipeline_mode = #tpu.pipeline_mode<synchronous>, transform_indices = @transform_14, window_bounds = array<i64: 8, 128>}, {pipeline_mode = #tpu.pipeline_mode<synchronous>, transform_indices = @transform_15, window_bounds = array<i64: 1, 128>}, {transform_indices = @transform_16, window_bounds = array<i64: 16, 128>}, {transform_indices = @transform_17, window_bounds = array<i64: 16, 32>}]} {
    %c0 = arith.constant 0 : index
    %c0_0 = arith.constant 0 : index
    %0 = vector.load %arg1[%c0, %c0_0] : memref<16x8xf32, #tpu.memory_space<vmem>>, vector<16x8xf32>
    %c0_1 = arith.constant 0 : index
    %c0_2 = arith.constant 0 : index
    %1 = vector.load %arg2[%c0_1, %c0_2] : memref<16x32xf32, #tpu.memory_space<vmem>>, vector<16x32xf32>
    %c0_3 = arith.constant 0 : index
    %c0_4 = arith.constant 0 : index
    %c0_5 = arith.constant 0 : index
    %2 = vector.load %arg3[%c0_3, %c0_4, %c0_5] : memref<16x16x32xbf16, #tpu.memory_space<vmem>>, vector<16x16x32xbf16>
    %3 = arith.extf %2 : vector<16x16x32xbf16> to vector<16x16x32xf32>
    %c0_6 = arith.constant 0 : index
    %c0_7 = arith.constant 0 : index
    %4 = vector.load %arg4[%c0_6, %c0_7] : memref<32x32xf32, #tpu.memory_space<vmem>>, vector<32x32xf32>
    %cst = arith.constant dense<0.000000e+00> : vector<16x32xf32>
    %5 = tpu.matmul %1, %4, %cst {dimension_numbers = #tpu.dot_dimension_numbers<[1], [0], [0], [1], [0, 0, 1, 1], [], []>} : vector<16x32xf32>, vector<32x32xf32>, vector<16x32xf32> -> vector<16x32xf32>
    %c0_8 = arith.constant 0 : index
    %c0_9 = arith.constant 0 : index
    %6 = vector.load %arg6[%c0_8, %c0_9] : memref<1x32xf32, #tpu.memory_space<vmem>>, vector<1x32xf32>
    %7 = vector.broadcast %6 : vector<1x32xf32> to vector<16x32xf32>
    %8 = arith.addf %5, %7 : vector<16x32xf32>
    %9 = vector.shape_cast %3 : vector<16x16x32xf32> to vector<256x32xf32>
    %c0_10 = arith.constant 0 : index
    %c0_11 = arith.constant 0 : index
    %10 = vector.load %arg5[%c0_10, %c0_11] : memref<32x32xf32, #tpu.memory_space<vmem>>, vector<32x32xf32>
    %cst_12 = arith.constant dense<0.000000e+00> : vector<256x32xf32>
    %11 = tpu.matmul %9, %10, %cst_12 {dimension_numbers = #tpu.dot_dimension_numbers<[1], [0], [0], [1], [0, 0, 1, 1], [], []>} : vector<256x32xf32>, vector<32x32xf32>, vector<256x32xf32> -> vector<256x32xf32>
    %12 = vector.shape_cast %11 : vector<256x32xf32> to vector<16x16x32xf32>
    %13 = vector.shape_cast %8 : vector<16x32xf32> to vector<16x1x32xf32>
    %14 = vector.broadcast %13 : vector<16x1x32xf32> to vector<16x16x32xf32>
    %15 = arith.addf %12, %14 : vector<16x16x32xf32>
    %16 = math.tanh %15 : vector<16x16x32xf32>
    %c0_13 = arith.constant 0 : index
    %c0_14 = arith.constant 0 : index
    %17 = vector.load %arg7[%c0_13, %c0_14] : memref<1x32xf32, #tpu.memory_space<vmem>>, vector<1x32xf32>
    %18 = vector.shape_cast %17 : vector<1x32xf32> to vector<1x1x32xf32>
    %19 = vector.broadcast %18 : vector<1x1x32xf32> to vector<16x16x32xf32>
    %20 = arith.mulf %16, %19 : vector<16x16x32xf32>
    %cst_15 = arith.constant dense<0.000000e+00> : vector<16x16xf32>
    %21 = vector.multi_reduction <add>, %20, %cst_15 [2] : vector<16x16x32xf32> to vector<16x16xf32>
    %cst_16 = arith.constant dense<0xFF800000> : vector<16xf32>
    %22 = vector.multi_reduction <maximumf>, %21, %cst_16 [1] : vector<16x16xf32> to vector<16xf32>
    %23 = vector.shape_cast %22 : vector<16xf32> to vector<16x1xf32>
    %24 = vector.broadcast %23 : vector<16x1xf32> to vector<16x16xf32>
    %25 = arith.subf %21, %24 : vector<16x16xf32>
    %26 = math.exp %25 : vector<16x16xf32>
    %cst_17 = arith.constant dense<0.000000e+00> : vector<16xf32>
    %27 = vector.multi_reduction <add>, %26, %cst_17 [1] : vector<16x16xf32> to vector<16xf32>
    %28 = vector.shape_cast %27 : vector<16xf32> to vector<16x1xf32>
    %29 = tpu.reciprocal %28 {approx = true} : vector<16x1xf32> -> vector<16x1xf32>
    %30 = vector.broadcast %29 : vector<16x1xf32> to vector<16x16xf32>
    %31 = arith.mulf %26, %30 : vector<16x16xf32>
    %32 = vector.shape_cast %31 : vector<16x16xf32> to vector<16x16x1xf32>
    %33 = vector.broadcast %32 : vector<16x16x1xf32> to vector<16x16x32xf32>
    %34 = arith.mulf %33, %3 : vector<16x16x32xf32>
    %cst_18 = arith.constant dense<0.000000e+00> : vector<16x32xf32>
    %35 = vector.multi_reduction <add>, %34, %cst_18 [1] : vector<16x16x32xf32> to vector<16x32xf32>
    %c0_19 = arith.constant 0 : index
    %c0_20 = arith.constant 0 : index
    %c0_21 = arith.constant 0 : index
    %36 = vector.load %arg8[%c0_19, %c0_20, %c0_21] : memref<3x8x32xf32, #tpu.memory_space<vmem>>, vector<1x8x32xf32>
    %37 = vector.shape_cast %36 : vector<1x8x32xf32> to vector<8x32xf32>
    %cst_22 = arith.constant dense<0.000000e+00> : vector<16x32xf32>
    %38 = tpu.matmul %0, %37, %cst_22 {dimension_numbers = #tpu.dot_dimension_numbers<[1], [0], [0], [1], [0, 0, 1, 1], [], []>} : vector<16x8xf32>, vector<8x32xf32>, vector<16x32xf32> -> vector<16x32xf32>
    %c0_23 = arith.constant 0 : index
    %c0_24 = arith.constant 0 : index
    %c0_25 = arith.constant 0 : index
    %39 = vector.load %arg9[%c0_23, %c0_24, %c0_25] : memref<3x32x32xf32, #tpu.memory_space<vmem>>, vector<1x32x32xf32>
    %40 = vector.shape_cast %39 : vector<1x32x32xf32> to vector<32x32xf32>
    %cst_26 = arith.constant dense<0.000000e+00> : vector<16x32xf32>
    %41 = tpu.matmul %35, %40, %cst_26 {dimension_numbers = #tpu.dot_dimension_numbers<[1], [0], [0], [1], [0, 0, 1, 1], [], []>} : vector<16x32xf32>, vector<32x32xf32>, vector<16x32xf32> -> vector<16x32xf32>
    %42 = arith.addf %38, %41 : vector<16x32xf32>
    %c0_27 = arith.constant 0 : index
    %c0_28 = arith.constant 0 : index
    %c0_29 = arith.constant 0 : index
    %43 = vector.load %arg11[%c0_27, %c0_28, %c0_29] : memref<3x1x32xf32, #tpu.memory_space<vmem>>, vector<1x1x32xf32>
    %44 = vector.shape_cast %43 : vector<1x1x32xf32> to vector<1x32xf32>
    %45 = vector.broadcast %44 : vector<1x32xf32> to vector<16x32xf32>
    %46 = arith.addf %42, %45 : vector<16x32xf32>
    %c0_30 = arith.constant 0 : index
    %c0_31 = arith.constant 0 : index
    %c0_32 = arith.constant 0 : index
    %47 = vector.load %arg10[%c0_30, %c0_31, %c0_32] : memref<3x32x32xf32, #tpu.memory_space<vmem>>, vector<1x32x32xf32>
    %48 = vector.shape_cast %47 : vector<1x32x32xf32> to vector<32x32xf32>
    %cst_33 = arith.constant dense<0.000000e+00> : vector<16x32xf32>
    %49 = tpu.matmul %1, %48, %cst_33 {dimension_numbers = #tpu.dot_dimension_numbers<[1], [0], [0], [1], [0, 0, 1, 1], [], []>} : vector<16x32xf32>, vector<32x32xf32>, vector<16x32xf32> -> vector<16x32xf32>
    %c0_34 = arith.constant 0 : index
    %c0_35 = arith.constant 0 : index
    %c0_36 = arith.constant 0 : index
    %50 = vector.load %arg12[%c0_34, %c0_35, %c0_36] : memref<3x1x32xf32, #tpu.memory_space<vmem>>, vector<1x1x32xf32>
    %51 = vector.shape_cast %50 : vector<1x1x32xf32> to vector<1x32xf32>
    %52 = vector.broadcast %51 : vector<1x32xf32> to vector<16x32xf32>
    %53 = arith.addf %49, %52 : vector<16x32xf32>
    %54 = arith.addf %46, %53 : vector<16x32xf32>
    %cst_37 = arith.constant 5.000000e-01 : f32
    %55 = vector.broadcast %cst_37 : f32 to vector<16x32xf32>
    %56 = arith.mulf %55, %54 : vector<16x32xf32>
    %57 = math.tanh %56 : vector<16x32xf32>
    %cst_38 = arith.constant 1.000000e+00 : f32
    %58 = vector.broadcast %cst_38 : f32 to vector<16x32xf32>
    %59 = arith.addf %57, %58 : vector<16x32xf32>
    %cst_39 = arith.constant 5.000000e-01 : f32
    %60 = vector.broadcast %cst_39 : f32 to vector<16x32xf32>
    %61 = arith.mulf %60, %59 : vector<16x32xf32>
    %c1 = arith.constant 1 : index
    %c0_40 = arith.constant 0 : index
    %c0_41 = arith.constant 0 : index
    %62 = vector.load %arg8[%c1, %c0_40, %c0_41] : memref<3x8x32xf32, #tpu.memory_space<vmem>>, vector<1x8x32xf32>
    %63 = vector.shape_cast %62 : vector<1x8x32xf32> to vector<8x32xf32>
    %cst_42 = arith.constant dense<0.000000e+00> : vector<16x32xf32>
    %64 = tpu.matmul %0, %63, %cst_42 {dimension_numbers = #tpu.dot_dimension_numbers<[1], [0], [0], [1], [0, 0, 1, 1], [], []>} : vector<16x8xf32>, vector<8x32xf32>, vector<16x32xf32> -> vector<16x32xf32>
    %c1_43 = arith.constant 1 : index
    %c0_44 = arith.constant 0 : index
    %c0_45 = arith.constant 0 : index
    %65 = vector.load %arg9[%c1_43, %c0_44, %c0_45] : memref<3x32x32xf32, #tpu.memory_space<vmem>>, vector<1x32x32xf32>
    %66 = vector.shape_cast %65 : vector<1x32x32xf32> to vector<32x32xf32>
    %cst_46 = arith.constant dense<0.000000e+00> : vector<16x32xf32>
    %67 = tpu.matmul %35, %66, %cst_46 {dimension_numbers = #tpu.dot_dimension_numbers<[1], [0], [0], [1], [0, 0, 1, 1], [], []>} : vector<16x32xf32>, vector<32x32xf32>, vector<16x32xf32> -> vector<16x32xf32>
    %68 = arith.addf %64, %67 : vector<16x32xf32>
    %c1_47 = arith.constant 1 : index
    %c0_48 = arith.constant 0 : index
    %c0_49 = arith.constant 0 : index
    %69 = vector.load %arg11[%c1_47, %c0_48, %c0_49] : memref<3x1x32xf32, #tpu.memory_space<vmem>>, vector<1x1x32xf32>
    %70 = vector.shape_cast %69 : vector<1x1x32xf32> to vector<1x32xf32>
    %71 = vector.broadcast %70 : vector<1x32xf32> to vector<16x32xf32>
    %72 = arith.addf %68, %71 : vector<16x32xf32>
    %c1_50 = arith.constant 1 : index
    %c0_51 = arith.constant 0 : index
    %c0_52 = arith.constant 0 : index
    %73 = vector.load %arg10[%c1_50, %c0_51, %c0_52] : memref<3x32x32xf32, #tpu.memory_space<vmem>>, vector<1x32x32xf32>
    %74 = vector.shape_cast %73 : vector<1x32x32xf32> to vector<32x32xf32>
    %cst_53 = arith.constant dense<0.000000e+00> : vector<16x32xf32>
    %75 = tpu.matmul %1, %74, %cst_53 {dimension_numbers = #tpu.dot_dimension_numbers<[1], [0], [0], [1], [0, 0, 1, 1], [], []>} : vector<16x32xf32>, vector<32x32xf32>, vector<16x32xf32> -> vector<16x32xf32>
    %c1_54 = arith.constant 1 : index
    %c0_55 = arith.constant 0 : index
    %c0_56 = arith.constant 0 : index
    %76 = vector.load %arg12[%c1_54, %c0_55, %c0_56] : memref<3x1x32xf32, #tpu.memory_space<vmem>>, vector<1x1x32xf32>
    %77 = vector.shape_cast %76 : vector<1x1x32xf32> to vector<1x32xf32>
    %78 = vector.broadcast %77 : vector<1x32xf32> to vector<16x32xf32>
    %79 = arith.addf %75, %78 : vector<16x32xf32>
    %80 = arith.addf %72, %79 : vector<16x32xf32>
    %cst_57 = arith.constant 5.000000e-01 : f32
    %81 = vector.broadcast %cst_57 : f32 to vector<16x32xf32>
    %82 = arith.mulf %81, %80 : vector<16x32xf32>
    %83 = math.tanh %82 : vector<16x32xf32>
    %cst_58 = arith.constant 1.000000e+00 : f32
    %84 = vector.broadcast %cst_58 : f32 to vector<16x32xf32>
    %85 = arith.addf %83, %84 : vector<16x32xf32>
    %cst_59 = arith.constant 5.000000e-01 : f32
    %86 = vector.broadcast %cst_59 : f32 to vector<16x32xf32>
    %87 = arith.mulf %86, %85 : vector<16x32xf32>
    %c2 = arith.constant 2 : index
    %c0_60 = arith.constant 0 : index
    %c0_61 = arith.constant 0 : index
    %88 = vector.load %arg8[%c2, %c0_60, %c0_61] : memref<3x8x32xf32, #tpu.memory_space<vmem>>, vector<1x8x32xf32>
    %89 = vector.shape_cast %88 : vector<1x8x32xf32> to vector<8x32xf32>
    %cst_62 = arith.constant dense<0.000000e+00> : vector<16x32xf32>
    %90 = tpu.matmul %0, %89, %cst_62 {dimension_numbers = #tpu.dot_dimension_numbers<[1], [0], [0], [1], [0, 0, 1, 1], [], []>} : vector<16x8xf32>, vector<8x32xf32>, vector<16x32xf32> -> vector<16x32xf32>
    %c2_63 = arith.constant 2 : index
    %c0_64 = arith.constant 0 : index
    %c0_65 = arith.constant 0 : index
    %91 = vector.load %arg9[%c2_63, %c0_64, %c0_65] : memref<3x32x32xf32, #tpu.memory_space<vmem>>, vector<1x32x32xf32>
    %92 = vector.shape_cast %91 : vector<1x32x32xf32> to vector<32x32xf32>
    %cst_66 = arith.constant dense<0.000000e+00> : vector<16x32xf32>
    %93 = tpu.matmul %35, %92, %cst_66 {dimension_numbers = #tpu.dot_dimension_numbers<[1], [0], [0], [1], [0, 0, 1, 1], [], []>} : vector<16x32xf32>, vector<32x32xf32>, vector<16x32xf32> -> vector<16x32xf32>
    %94 = arith.addf %90, %93 : vector<16x32xf32>
    %c2_67 = arith.constant 2 : index
    %c0_68 = arith.constant 0 : index
    %c0_69 = arith.constant 0 : index
    %95 = vector.load %arg11[%c2_67, %c0_68, %c0_69] : memref<3x1x32xf32, #tpu.memory_space<vmem>>, vector<1x1x32xf32>
    %96 = vector.shape_cast %95 : vector<1x1x32xf32> to vector<1x32xf32>
    %97 = vector.broadcast %96 : vector<1x32xf32> to vector<16x32xf32>
    %98 = arith.addf %94, %97 : vector<16x32xf32>
    %c2_70 = arith.constant 2 : index
    %c0_71 = arith.constant 0 : index
    %c0_72 = arith.constant 0 : index
    %99 = vector.load %arg10[%c2_70, %c0_71, %c0_72] : memref<3x32x32xf32, #tpu.memory_space<vmem>>, vector<1x32x32xf32>
    %100 = vector.shape_cast %99 : vector<1x32x32xf32> to vector<32x32xf32>
    %cst_73 = arith.constant dense<0.000000e+00> : vector<16x32xf32>
    %101 = tpu.matmul %1, %100, %cst_73 {dimension_numbers = #tpu.dot_dimension_numbers<[1], [0], [0], [1], [0, 0, 1, 1], [], []>} : vector<16x32xf32>, vector<32x32xf32>, vector<16x32xf32> -> vector<16x32xf32>
    %c2_74 = arith.constant 2 : index
    %c0_75 = arith.constant 0 : index
    %c0_76 = arith.constant 0 : index
    %102 = vector.load %arg12[%c2_74, %c0_75, %c0_76] : memref<3x1x32xf32, #tpu.memory_space<vmem>>, vector<1x1x32xf32>
    %103 = vector.shape_cast %102 : vector<1x1x32xf32> to vector<1x32xf32>
    %104 = vector.broadcast %103 : vector<1x32xf32> to vector<16x32xf32>
    %105 = arith.addf %101, %104 : vector<16x32xf32>
    %106 = arith.mulf %61, %105 : vector<16x32xf32>
    %107 = arith.addf %98, %106 : vector<16x32xf32>
    %108 = math.tanh %107 : vector<16x32xf32>
    %cst_77 = arith.constant 1.000000e+00 : f32
    %109 = vector.broadcast %cst_77 : f32 to vector<16x32xf32>
    %110 = arith.subf %109, %87 : vector<16x32xf32>
    %111 = arith.mulf %110, %108 : vector<16x32xf32>
    %112 = arith.mulf %87, %1 : vector<16x32xf32>
    %113 = arith.addf %111, %112 : vector<16x32xf32>
    %c0_78 = arith.constant 0 : index
    %c0_79 = arith.constant 0 : index
    %114 = vector.load %arg13[%c0_78, %c0_79] : memref<32x128xf32, #tpu.memory_space<vmem>>, vector<32x128xf32>
    %cst_80 = arith.constant dense<0.000000e+00> : vector<16x128xf32>
    %115 = tpu.matmul %113, %114, %cst_80 {dimension_numbers = #tpu.dot_dimension_numbers<[1], [0], [0], [1], [0, 0, 1, 1], [], []>} : vector<16x32xf32>, vector<32x128xf32>, vector<16x128xf32> -> vector<16x128xf32>
    %c0_81 = arith.constant 0 : index
    %c0_82 = arith.constant 0 : index
    %116 = vector.load %arg14[%c0_81, %c0_82] : memref<32x128xf32, #tpu.memory_space<vmem>>, vector<32x128xf32>
    %cst_83 = arith.constant dense<0.000000e+00> : vector<16x128xf32>
    %117 = tpu.matmul %35, %116, %cst_83 {dimension_numbers = #tpu.dot_dimension_numbers<[1], [0], [0], [1], [0, 0, 1, 1], [], []>} : vector<16x32xf32>, vector<32x128xf32>, vector<16x128xf32> -> vector<16x128xf32>
    %118 = arith.addf %115, %117 : vector<16x128xf32>
    %c0_84 = arith.constant 0 : index
    %c0_85 = arith.constant 0 : index
    %119 = vector.load %arg15[%c0_84, %c0_85] : memref<8x128xf32, #tpu.memory_space<vmem>>, vector<8x128xf32>
    %cst_86 = arith.constant dense<0.000000e+00> : vector<16x128xf32>
    %120 = tpu.matmul %0, %119, %cst_86 {dimension_numbers = #tpu.dot_dimension_numbers<[1], [0], [0], [1], [0, 0, 1, 1], [], []>} : vector<16x8xf32>, vector<8x128xf32>, vector<16x128xf32> -> vector<16x128xf32>
    %121 = arith.addf %118, %120 : vector<16x128xf32>
    %c0_87 = arith.constant 0 : index
    %c0_88 = arith.constant 0 : index
    %122 = vector.load %arg16[%c0_87, %c0_88] : memref<1x128xf32, #tpu.memory_space<vmem>>, vector<1x128xf32>
    %123 = vector.broadcast %122 : vector<1x128xf32> to vector<16x128xf32>
    %124 = arith.addf %121, %123 : vector<16x128xf32>
    %c0_89 = arith.constant 0 : index
    %c0_90 = arith.constant 0 : index
    %125 = vector.load %arg17[%c0_89, %c0_90] : memref<16x128xf32, #tpu.memory_space<vmem>>, vector<16x128xf32>
    tpu.vector_store %arg17[%c0_89, %c0_90], %124 {strides = array<i32>} : memref<16x128xf32, #tpu.memory_space<vmem>>, vector<16x128xf32>,
    %c0_91 = arith.constant 0 : index
    %c0_92 = arith.constant 0 : index
    %126 = vector.load %arg18[%c0_91, %c0_92] : memref<16x32xf32, #tpu.memory_space<vmem>>, vector<16x32xf32>
    tpu.vector_store %arg18[%c0_91, %c0_92], %113 {strides = array<i32>} : memref<16x32xf32, #tpu.memory_space<vmem>>, vector<16x32xf32>,
    return
  }
  func.func @transform_0(%arg0: i32) -> (i32, i32) {
    %c0_i32 = arith.constant 0 : i32
    %c0_i32_0 = arith.constant 0 : i32
    return %arg0, %c0_i32 : i32, i32
  }
  func.func @transform_1(%arg0: i32) -> (i32, i32) {
    %c0_i32 = arith.constant 0 : i32
    %c0_i32_0 = arith.constant 0 : i32
    return %arg0, %c0_i32 : i32, i32
  }
  func.func @transform_2(%arg0: i32) -> (i32, i32, i32) {
    %c0_i32 = arith.constant 0 : i32
    %c0_i32_0 = arith.constant 0 : i32
    %c0_i32_1 = arith.constant 0 : i32
    return %arg0, %c0_i32, %c0_i32_0 : i32, i32, i32
  }
  func.func @transform_3(%arg0: i32) -> (i32, i32) {
    %c0_i32 = arith.constant 0 : i32
    %c0_i32_0 = arith.constant 0 : i32
    %c0_i32_1 = arith.constant 0 : i32
    return %c0_i32, %c0_i32_0 : i32, i32
  }
  func.func @transform_4(%arg0: i32) -> (i32, i32) {
    %c0_i32 = arith.constant 0 : i32
    %c0_i32_0 = arith.constant 0 : i32
    %c0_i32_1 = arith.constant 0 : i32
    return %c0_i32, %c0_i32_0 : i32, i32
  }
  func.func @transform_5(%arg0: i32) -> (i32, i32) {
    %c0_i32 = arith.constant 0 : i32
    %c0_i32_0 = arith.constant 0 : i32
    %c0_i32_1 = arith.constant 0 : i32
    return %c0_i32, %c0_i32_0 : i32, i32
  }
  func.func @transform_6(%arg0: i32) -> (i32, i32) {
    %c0_i32 = arith.constant 0 : i32
    %c0_i32_0 = arith.constant 0 : i32
    %c0_i32_1 = arith.constant 0 : i32
    return %c0_i32, %c0_i32_0 : i32, i32
  }
  func.func @transform_7(%arg0: i32) -> (i32, i32, i32) {
    %c0_i32 = arith.constant 0 : i32
    %c0_i32_0 = arith.constant 0 : i32
    %c0_i32_1 = arith.constant 0 : i32
    %c0_i32_2 = arith.constant 0 : i32
    return %c0_i32, %c0_i32_0, %c0_i32_1 : i32, i32, i32
  }
  func.func @transform_8(%arg0: i32) -> (i32, i32, i32) {
    %c0_i32 = arith.constant 0 : i32
    %c0_i32_0 = arith.constant 0 : i32
    %c0_i32_1 = arith.constant 0 : i32
    %c0_i32_2 = arith.constant 0 : i32
    return %c0_i32, %c0_i32_0, %c0_i32_1 : i32, i32, i32
  }
  func.func @transform_9(%arg0: i32) -> (i32, i32, i32) {
    %c0_i32 = arith.constant 0 : i32
    %c0_i32_0 = arith.constant 0 : i32
    %c0_i32_1 = arith.constant 0 : i32
    %c0_i32_2 = arith.constant 0 : i32
    return %c0_i32, %c0_i32_0, %c0_i32_1 : i32, i32, i32
  }
  func.func @transform_10(%arg0: i32) -> (i32, i32, i32) {
    %c0_i32 = arith.constant 0 : i32
    %c0_i32_0 = arith.constant 0 : i32
    %c0_i32_1 = arith.constant 0 : i32
    %c0_i32_2 = arith.constant 0 : i32
    return %c0_i32, %c0_i32_0, %c0_i32_1 : i32, i32, i32
  }
  func.func @transform_11(%arg0: i32) -> (i32, i32, i32) {
    %c0_i32 = arith.constant 0 : i32
    %c0_i32_0 = arith.constant 0 : i32
    %c0_i32_1 = arith.constant 0 : i32
    %c0_i32_2 = arith.constant 0 : i32
    return %c0_i32, %c0_i32_0, %c0_i32_1 : i32, i32, i32
  }
  func.func @transform_12(%arg0: i32) -> (i32, i32) {
    %c0_i32 = arith.constant 0 : i32
    %c0_i32_0 = arith.constant 0 : i32
    %c0_i32_1 = arith.constant 0 : i32
    return %c0_i32, %c0_i32_0 : i32, i32
  }
  func.func @transform_13(%arg0: i32) -> (i32, i32) {
    %c0_i32 = arith.constant 0 : i32
    %c0_i32_0 = arith.constant 0 : i32
    %c0_i32_1 = arith.constant 0 : i32
    return %c0_i32, %c0_i32_0 : i32, i32
  }
  func.func @transform_14(%arg0: i32) -> (i32, i32) {
    %c0_i32 = arith.constant 0 : i32
    %c0_i32_0 = arith.constant 0 : i32
    %c0_i32_1 = arith.constant 0 : i32
    return %c0_i32, %c0_i32_0 : i32, i32
  }
  func.func @transform_15(%arg0: i32) -> (i32, i32) {
    %c0_i32 = arith.constant 0 : i32
    %c0_i32_0 = arith.constant 0 : i32
    %c0_i32_1 = arith.constant 0 : i32
    return %c0_i32, %c0_i32_0 : i32, i32
  }
  func.func @transform_16(%arg0: i32) -> (i32, i32) {
    %c0_i32 = arith.constant 0 : i32
    %c0_i32_0 = arith.constant 0 : i32
    return %arg0, %c0_i32 : i32, i32
  }
  func.func @transform_17(%arg0: i32) -> (i32, i32) {
    %c0_i32 = arith.constant 0 : i32
    %c0_i32_0 = arith.constant 0 : i32
    return %arg0, %c0_i32 : i32, i32
  }
}

</mosaic_0001>

<bundles_post_ra>
// kernel: tpu_custom_call.1
= control target key start
LH: loop header
LB: loop body
LE: loop exit
PB: predicated region body
PF: predicated region fallthrough
CT: control target
= control target key end

     0   :  { %s5550_s0 = inlined_call_operand.vmem [shape: f32[16,8], index: 0, kind: input, shape index: {}]   ;;  %s5551_s1 = inlined_call_operand.hbm [shape: f32[16,32], index: 1, kind: input, shape index: {}]   ;;  %s5552_s2 = inlined_call_operand.hbm [shape: bf16[16,16,32], index: 2, kind: input, shape index: {}]   ;;  %s5553_s3 = inlined_call_operand.vmem [shape: f32[32,32], index: 3, kind: input, shape index: {}]   ;;  %s5554_s4 = inlined_call_operand.hbm [shape: f32[32,32], index: 4, kind: input, shape index: {}]   ;;  %s5555_s5 = inlined_call_operand.vmem [shape: f32[1,32], index: 5, kind: input, shape index: {}]   ;;  %s5556_s6 = inlined_call_operand.hbm [shape: f32[1,32], index: 6, kind: input, shape index: {}]   ;;  %s5557_s7 = inlined_call_operand.hbm [shape: f32[3,8,32], index: 7, kind: input, shape index: {}]   ;;  %s5558_s8 = inlined_call_operand.hbm [shape: f32[3,32,32], index: 8, kind: input, shape index: {}]   ;;  %s5559_s9 = inlined_call_operand.hbm [shape: f32[3,32,32], index: 9, kind: input, shape index: {}]   ;;  %s5560_s10 = inlined_call_operand.hbm [shape: f32[3,1,32], index: 10, kind: input, shape index: {}]   ;;  %s5561_s11 = inlined_call_operand.hbm [shape: f32[3,1,32], index: 11, kind: input, shape index: {}]   ;;  %s5562_s12 = inlined_call_operand.vmem [shape: f32[32,128], index: 12, kind: input, shape index: {}]   ;;  %s5563_s13 = inlined_call_operand.hbm [shape: f32[32,128], index: 13, kind: input, shape index: {}]   ;;  %s5564_s14 = inlined_call_operand.vmem [shape: f32[8,128], index: 14, kind: input, shape index: {}]   ;;  %s5565_s15 = inlined_call_operand.vmem [shape: f32[1,128], index: 15, kind: input, shape index: {}]   ;;  %s5566_s16 = inlined_call_operand.hbm [shape: f32[16,128], index: 16, kind: output, shape index: {0}]   ;;  %s5567_s17 = inlined_call_operand.hbm [shape: f32[16,32], index: 17, kind: output, shape index: {1}]  }
   0x1   :  { %5639 = sst [smem:[#allocation49_spill]] %s5550_s0 }
   0x2   :  { %5640 = sst [smem:[#allocation50_spill]] %s5551_s1 }
   0x3   :  { %23 = vsyncpa [#allocation3], 0 }
   0x4   :  { %24 = vsyncpa [#allocation6], 0 }
   0x5   :  { %25 = vsyncpa [#allocation9], 0 }
   0x6   :  { %26 = vsyncpa [#allocation12], 0 }
   0x7   :  { %27 = vsyncpa [#allocation15], 0 }
   0x8   :  { %28 = vsyncpa [#allocation18], 0 }
   0x9   :  { %29 = vsyncpa [#allocation4], 0 }
   0xa   :  { %30 = vsyncpa [#allocation21], 0  ;;  %s4295_s24 = smov [#allocation5]   ;;  %s4015_s28 = scalar_lea.hbm %s5552_s2, 2048 }
   0xb   :  { %s50_s25 = sshll.u32 %s4295_s24, 4  ;;  %p4016_p0 = scmp.ne.s32.totalorder %s5552_s2, %s4015_s28  ;;  %s51_s25 = int_to_ptr.vmem [resolvable:$true] %s50_s25 }
   0xc   :  { %p4019_p1 = scmp.lt.u32.totalorder %s4015_s28, %s5552_s2 }
   0xe   :  { %p4021_p2 = pnand %p4019_p1, %p4016_p0 }
  0x10   :  { %4024 = shalt.err (!%p4021_p2)
}
  0x11   :  { %s4025_s19 = scalar_lea.vmem %s51_s25, 2048  ;;  %p4030_p4 = scmp.lt.s32.totalorder %s51_s25, %s51_s25 }
  0x12   :  { %p4026_p3 = scmp.ne.s32.totalorder %s51_s25, %s4025_s19  ;;  %p4031_p5 = scmp.lt.s32.totalorder %s4025_s19, %s4025_s19 }
  0x14   :  { %p4032_p6 = por %p4031_p5, %p4030_p4 }
  0x16   :  { %p4033_p7 = pnand %p4032_p6, %p4026_p3 }
  0x18   :  { %4036 = shalt.err (!%p4033_p7)
}
  0x19   :  { %s4296_s1 = smov 64   ;;  %s4297_s20 = smov 4  }
  0x1a   :  { %56 = dma.hbm_to_vmem [thread:$0]  %s5552_s2, 2048, %s51_s25, [#allocation6], %s4296_s1, %s4296_s1, %s4297_s20  }
  0x1b   :  { %s4298_s23 = smov [#allocation8]   ;;  %s4037_s28 = scalar_lea.hbm %s5556_s6, 16 }
  0x1c   :  { %s79_s24 = sshll.u32 %s4298_s23, 4  ;;  %p4038_p8 = scmp.ne.s32.totalorder %s5556_s6, %s4037_s28  ;;  %s80_s24 = int_to_ptr.vmem [resolvable:$true] %s79_s24 }
  0x1d   :  { %p4041_p9 = scmp.lt.u32.totalorder %s4037_s28, %s5556_s6 }
  0x1f   :  { %p4043_p10 = pnand %p4041_p9, %p4038_p8 }
  0x21   :  { %4046 = shalt.err (!%p4043_p10)
}
  0x22   :  { %s4047_s19 = scalar_lea.vmem %s80_s24, 16  ;;  %s4051_s2 = scalar_lea.vmem %s80_s24, 32 }
  0x23   :  { %p4048_p11 = scmp.ne.s32.totalorder %s80_s24, %s4047_s19  ;;  %p4052_p12 = scmp.lt.s32.totalorder %s80_s24, %s80_s24 }
  0x24   :  { %p4053_p13 = scmp.lt.s32.totalorder %s4051_s2, %s4047_s19 }
  0x26   :  { %p4054_p0 = por %p4053_p13, %p4052_p12 }
  0x28   :  { %p4055_p1 = pnand %p4054_p0, %p4048_p11 }
  0x2a   :  { %4058 = shalt.err (!%p4055_p1)
}
  0x2b   :  { %82 = dma.hbm_to_vmem [thread:$0]  %s5556_s6, 16, %s80_s24, [#allocation9]  }
  0x2c   :  { %s4299_s20 = smov [#allocation11]   ;;  %s4300_s22 = smov [#allocation14]  }
  0x2d   :  { %s100_s21 = sshll.u32 %s4299_s20, 4  ;;  %s124_s23 = sshll.u32 %s4300_s22, 4  ;;  %s101_s21 = int_to_ptr.vmem [resolvable:$true] %s100_s21  ;;  %s4429_s23 = int_to_ptr.vmem [resolvable:$true] %s124_s23 }
  0x2e   :  { %s4059_s28 = scalar_lea.hbm %s5558_s8, 1536 }
  0x2f   :  { %p4060_p2 = scmp.ne.s32.totalorder %s5558_s8, %s4059_s28  ;;  %p4063_p3 = scmp.lt.u32.totalorder %s4059_s28, %s5558_s8 }
  0x31   :  { %p4065_p4 = pnand %p4063_p3, %p4060_p2 }
  0x33   :  { %4068 = shalt.err (!%p4065_p4)
}
  0x34   :  { %s4069_s6 = scalar_lea.vmem %s101_s21, 1536  ;;  %p4074_p6 = scmp.lt.s32.totalorder %s101_s21, %s101_s21 }
  0x35   :  { %p4070_p5 = scmp.ne.s32.totalorder %s101_s21, %s4069_s6  ;;  %p4075_p7 = scmp.lt.s32.totalorder %s4069_s6, %s4069_s6 }
  0x37   :  { %p4076_p8 = por %p4075_p7, %p4074_p6 }
  0x39   :  { %p4077_p9 = pnand %p4076_p8, %p4070_p5 }
  0x3b   :  { %4080 = shalt.err (!%p4077_p9)
}
  0x3c   :  { %s5570_s24 = smov 128   ;;  %s4302_s19 = smov 8  }
  0x3d   :  { %106 = dma.hbm_to_vmem [thread:$0]  %s5558_s8, 1536, %s101_s21, [#allocation12], %s5570_s24, %s5570_s24, %s4302_s19  }
  0x3e   :  { %s4081_s22 = scalar_lea.hbm %s5560_s10, 48 }
  0x3f   :  { %p4082_p10 = scmp.ne.s32.totalorder %s5560_s10, %s4081_s22  ;;  %p4085_p11 = scmp.lt.u32.totalorder %s4081_s22, %s5560_s10 }
  0x41   :  { %p4087_p12 = pnand %p4085_p11, %p4082_p10 }
  0x43   :  { %4090 = shalt.err (!%p4087_p12)
}
  0x44   :  { %s4091_s0 = scalar_lea.vmem %s4429_s23, 48  ;;  %s4095_s8 = scalar_lea.vmem %s4429_s23, 64 }
  0x45   :  { %p4092_p13 = scmp.ne.s32.totalorder %s4429_s23, %s4091_s0  ;;  %p4096_p0 = scmp.lt.s32.totalorder %s4429_s23, %s4429_s23 }
  0x46   :  { %p4097_p1 = scmp.lt.s32.totalorder %s4095_s8, %s4091_s0 }
  0x48   :  { %p4098_p2 = por %p4097_p1, %p4096_p0 }
  0x4a   :  { %p4099_p3 = pnand %p4098_p2, %p4092_p13 }
  0x4c   :  { %4102 = shalt.err (!%p4099_p3)
}
  0x4d   :  { %s4303_s21 = smov 16   ;;  %s4304_s30 = smov 1  }
  0x4e   :  { %130 = dma.hbm_to_vmem [thread:$0]  %s5560_s10, 48, %s4429_s23, [#allocation15], %s4303_s21, %s4303_s21, %s4304_s30  }
  0x4f   :  { %s4305_s2 = smov [#allocation2]   ;;  %s4306_s1 = smov [#allocation7]  }
  0x50   :  { %s38_s25 = sshll.u32 %s4305_s2, 4  ;;  %s64_s20 = sshll.u32 %s4306_s1, 4  ;;  %s39_s25 = int_to_ptr.vmem [resolvable:$true] %s38_s25  ;;  %s4467_s20 = int_to_ptr.vmem [resolvable:$true] %s64_s20 }
  0x51   :  { %s5641_s27 = sld [smem:[#allocation50_spill]] }
  0x57   :  { %s4103_s28 = scalar_lea.hbm %s5641_s27, 256 }
  0x58   :  { %p4104_p4 = scmp.ne.s32.totalorder %s5641_s27, %s4103_s28  ;;  %p4107_p5 = scmp.lt.u32.totalorder %s4103_s28, %s5641_s27 }
  0x5a   :  { %p4109_p6 = pnand %p4107_p5, %p4104_p4 }
  0x5c   :  { %4112 = shalt.err (!%p4109_p6)
}
  0x5d   :  { %s4113_s10 = scalar_lea.vmem %s39_s25, 256  ;;  %p4118_p8 = scmp.lt.s32.totalorder %s39_s25, %s39_s25 }
  0x5e   :  { %p4114_p7 = scmp.ne.s32.totalorder %s39_s25, %s4113_s10  ;;  %p4119_p9 = scmp.lt.s32.totalorder %s4113_s10, %s4113_s10 }
  0x60   :  { %p4120_p10 = por %p4119_p9, %p4118_p8 }
  0x62   :  { %p4121_p11 = pnand %p4120_p10, %p4114_p7 }
  0x64   :  { %4124 = shalt.err (!%p4121_p11)
}
  0x65   :  { %s5642_s23 = smov 128   ;;  %s4125_s24 = scalar_lea.hbm %s5554_s4, 512 }
  0x66   :  { %44 = dma.hbm_to_vmem [thread:$0]  %s5641_s27, 256, %s39_s25, [#allocation3], %s5642_s23, %s5642_s23, %s4302_s19  }
  0x67   :  { %p4126_p12 = scmp.ne.s32.totalorder %s5554_s4, %s4125_s24  ;;  %p4129_p13 = scmp.lt.u32.totalorder %s4125_s24, %s5554_s4 }
  0x69   :  { %p4131_p0 = pnand %p4129_p13, %p4126_p12 }
  0x6b   :  { %4134 = shalt.err (!%p4131_p0)
}
  0x6c   :  { %s4135_s0 = scalar_lea.vmem %s4467_s20, 512  ;;  %p4140_p2 = scmp.lt.s32.totalorder %s4467_s20, %s4467_s20 }
  0x6d   :  { %p4136_p1 = scmp.ne.s32.totalorder %s4467_s20, %s4135_s0  ;;  %p4141_p3 = scmp.lt.s32.totalorder %s4135_s0, %s4135_s0 }
  0x6f   :  { %p4142_p4 = por %p4141_p3, %p4140_p2 }
  0x71   :  { %p4143_p5 = pnand %p4142_p4, %p4136_p1 }
  0x73   :  { %4146 = shalt.err (!%p4143_p5)
}
  0x74   :  { %70 = dma.hbm_to_vmem [thread:$0]  %s5554_s4, 512, %s4467_s20, [#allocation6], %s5642_s23, %s5642_s23, %s4302_s19  }
  0x75   :  { %s4307_s8 = smov [#allocation10]   ;;  %s4308_s18 = smov [#allocation13]  }
  0x76   :  { %s88_s10 = sshll.u32 %s4307_s8, 4  ;;  %s112_s6 = sshll.u32 %s4308_s18, 4  ;;  %s89_s10 = int_to_ptr.vmem [resolvable:$true] %s88_s10  ;;  %s4504_s6 = int_to_ptr.vmem [resolvable:$true] %s112_s6 }
  0x77   :  { %s4147_s24 = scalar_lea.hbm %s5557_s7, 384 }
  0x78   :  { %p4148_p6 = scmp.ne.s32.totalorder %s5557_s7, %s4147_s24  ;;  %p4151_p7 = scmp.lt.u32.totalorder %s4147_s24, %s5557_s7 }
  0x7a   :  { %p4153_p8 = pnand %p4151_p7, %p4148_p6 }
  0x7c   :  { %4156 = shalt.err (!%p4153_p8)
}
  0x7d   :  { %s4157_s4 = scalar_lea.vmem %s89_s10, 384  ;;  %p4162_p10 = scmp.lt.s32.totalorder %s89_s10, %s89_s10 }
  0x7e   :  { %p4158_p9 = scmp.ne.s32.totalorder %s89_s10, %s4157_s4  ;;  %p4163_p11 = scmp.lt.s32.totalorder %s4157_s4, %s4157_s4 }
  0x80   :  { %p4164_p12 = por %p4163_p11, %p4162_p10 }
  0x82   :  { %p4165_p13 = pnand %p4164_p12, %p4158_p9 }
  0x84   :  { %4168 = shalt.err (!%p4165_p13)
}
  0x85   :  { %94 = dma.hbm_to_vmem [thread:$0]  %s5557_s7, 384, %s89_s10, [#allocation9], %s5642_s23, %s5642_s23, %s4302_s19  }
  0x86   :  { %s4169_s8 = scalar_lea.hbm %s5559_s9, 1536 }
  0x87   :  { %p4170_p0 = scmp.ne.s32.totalorder %s5559_s9, %s4169_s8  ;;  %p4173_p1 = scmp.lt.u32.totalorder %s4169_s8, %s5559_s9 }
  0x89   :  { %p4175_p2 = pnand %p4173_p1, %p4170_p0 }
  0x8b   :  { %4178 = shalt.err (!%p4175_p2)
}
  0x8c   :  { %s4179_s22 = scalar_lea.vmem %s4504_s6, 1536  ;;  %p4184_p4 = scmp.lt.s32.totalorder %s4504_s6, %s4504_s6 }
  0x8d   :  { %p4180_p3 = scmp.ne.s32.totalorder %s4504_s6, %s4179_s22  ;;  %p4185_p5 = scmp.lt.s32.totalorder %s4179_s22, %s4179_s22 }
  0x8f   :  { %p4186_p6 = por %p4185_p5, %p4184_p4 }
  0x91   :  { %p4187_p7 = pnand %p4186_p6, %p4180_p3 }
  0x93   :  { %4190 = shalt.err (!%p4187_p7)
}
  0x94   :  { %118 = dma.hbm_to_vmem [thread:$0]  %s5559_s9, 1536, %s4504_s6, [#allocation12], %s5642_s23, %s5642_s23, %s4302_s19  }
  0x95   :  { %s4309_s26 = smov [#allocation16]   ;;  %s4310_s29 = smov [#allocation17]  }
  0x96   :  { %s136_s28 = sshll.u32 %s4309_s26, 4  ;;  %s150_s4 = sshll.u32 %s4310_s29, 4  ;;  %s137_s28 = int_to_ptr.vmem [resolvable:$true] %s136_s28  ;;  %s4541_s4 = int_to_ptr.vmem [resolvable:$true] %s150_s4 }
  0x97   :  { %s4191_s25 = scalar_lea.hbm %s5561_s11, 48 }
  0x98   :  { %p4192_p8 = scmp.ne.s32.totalorder %s5561_s11, %s4191_s25  ;;  %p4195_p9 = scmp.lt.u32.totalorder %s4191_s25, %s5561_s11 }
  0x9a   :  { %p4197_p10 = pnand %p4195_p9, %p4192_p8 }
  0x9c   :  { %4200 = shalt.err (!%p4197_p10)
}
  0x9d   :  { %s4201_s9 = scalar_lea.vmem %s137_s28, 48  ;;  %s4205_s6 = scalar_lea.vmem %s137_s28, 64 }
  0x9e   :  { %p4202_p11 = scmp.ne.s32.totalorder %s137_s28, %s4201_s9  ;;  %p4206_p12 = scmp.lt.s32.totalorder %s137_s28, %s137_s28 }
  0x9f   :  { %p4207_p13 = scmp.lt.s32.totalorder %s4205_s6, %s4201_s9 }
  0xa1   :  { %p4208_p0 = por %p4207_p13, %p4206_p12 }
  0xa3   :  { %p4209_p1 = pnand %p4208_p0, %p4202_p11 }
  0xa5   :  { %4212 = shalt.err (!%p4209_p1)
}
  0xa6   :  { %142 = dma.hbm_to_vmem [thread:$0]  %s5561_s11, 48, %s137_s28, [#allocation15], %s4303_s21, %s4303_s21, %s4304_s30  }
  0xa7   :  { %s4213_s10 = scalar_lea.hbm %s5563_s13, 512 }
  0xa8   :  { %p4214_p2 = scmp.ne.s32.totalorder %s5563_s13, %s4213_s10  ;;  %p4217_p3 = scmp.lt.u32.totalorder %s4213_s10, %s5563_s13 }
  0xaa   :  { %p4219_p4 = pnand %p4217_p3, %p4214_p2 }
  0xac   :  { %4222 = shalt.err (!%p4219_p4)
}
  0xad   :  { %s4223_s25 = scalar_lea.vmem %s4541_s4, 512  ;;  %p4228_p6 = scmp.lt.s32.totalorder %s4541_s4, %s4541_s4 }
  0xae   :  { %p4224_p5 = scmp.ne.s32.totalorder %s4541_s4, %s4223_s25  ;;  %p4229_p7 = scmp.lt.s32.totalorder %s4223_s25, %s4223_s25 }
  0xb0   :  { %p4230_p8 = por %p4229_p7, %p4228_p6 }
  0xb2   :  { %p4231_p9 = pnand %p4230_p8, %p4224_p5 }
  0xb4   :  { %4234 = shalt.err (!%p4231_p9)
}
  0xb5   :  { %156 = dma.hbm_to_vmem [thread:$0]  %s5563_s13, 512, %s4541_s4, [#allocation18], %s5642_s23, %s5642_s23, %s4302_s19  }
  0xb6   :  { %4279 = dma.done.wait [#allocation3], 256  }
  0xb7   :  { %4280 = vsyncadd [#allocation3], 4294967040 }
  0xb8   :  { %4281 = dma.done.wait [#allocation6], 2560  }
  0xb9   :  { %4282 = vsyncadd [#allocation6], 4294964736 }
  0xba   :  { %4283 = dma.done.wait [#allocation9], 400  }
  0xbb   :  { %4284 = vsyncadd [#allocation9], 4294966896 }
  0xbc   :  { %4285 = dma.done.wait [#allocation12], 3072  }
  0xbd   :  { %4286 = vsyncadd [#allocation12], 4294964224 }
  0xbe   :  { %4287 = dma.done.wait [#allocation15], 96  }
  0xbf   :  { %4288 = vsyncadd [#allocation15], 4294967200 }
  0xc0   :  { %4289 = dma.done.wait [#allocation18], 512  }
  0xc1   :  { %4290 = vsyncadd [#allocation18], 4294966784  ;;  %v259_v0 = vld [vmem:[%s5553_s3] sm:$0xff]  ;;  %v260_v1 = vld [vmem:[%s5553_s3 + $0x8] sm:$0xff]  ;;  %vm270_vm0 = vcmask 261120   ;;  %vm1099_vm1 = vcmask 130112  }
  0xc2   :  { %v352_v2 = vld [vmem:[#allocation7] sm:$0xff]  ;;  %v3741_v3 = vpack.c.bf16 %v260_v1, %v259_v0  ;;  %v353_v4 = vld [vmem:[#allocation7 + $0x8] sm:$0xff]  ;;  %v261_v5 = vld [vmem:[%s5553_s3 + $0x10] sm:$0xff]  ;;  %v4311_v62 = vmov 1966171168   ;;  %v683_v0 = vlaneseq  ;;  %vm1236_vm2 = vcmask 1041409  }
  0xc3   :  { %v262_v6 = vld [vmem:[%s5553_s3 + $0x18] sm:$0xff]  ;;  %v3749_v7 = vpack.c.bf16 %v353_v4, %v352_v2  ;;  %v354_v9 = vld [vmem:[#allocation7 + $0x10] sm:$0xff]  ;;  %v355_v10 = vld [vmem:[#allocation7 + $0x18] sm:$0xff]  ;;  %v681_v63 = vunpack.c.l.s4 %v4311_v62  ;;  %vm1238_vm3 = vcmask 1042434   ;;  %vm1240_vm4 = vcmask 1043459   ;;  %s5713_s1 = sld [smem:[#allocation49_spill]] }
  0xc4   :  { %v3745_v8 = vpack.c.bf16 %v262_v6, %v261_v5  ;;  %v193_v11 = vld [vmem:[#allocation2] sm:$0xff]  ;;  %3742 = vmatprep.subr.bf16.mxu0 %v3741_v3  ;;  %v3753_v12 = vpack.c.bf16 %v355_v10, %v354_v9  ;;  %v4597_v15 = vld [vmem:[#allocation5 + $0x18] sm:$0xff]   ;;  %v4599_v16 = vld [vmem:[#allocation5] sm:$0xff]   ;;  %v4753_v2 = vshrl.u32 %v683_v0, 7  ;;  %vm1242_vm5 = vcmask 1044484  }
  0xc5   :  { %3574 = vmatprep.mubr.msk.f32.mxu0 %vm270_vm0, %v193_v11  ;;  %v4591_v13 = vld [vmem:[#allocation5 + $0x10] sm:$0xff]   ;;  %3821 = vmatprep.subr.bf16.mxu1 %v3749_v7  ;;  %5644 = vst [vmem:[#allocation31_spill] sm:$0xff] %v4597_v15  ;;  %5645 = vst [vmem:[#allocation32_spill] sm:$0xff] %v4599_v16  ;;  %v194_v18 = vld [vmem:[#allocation2 + $0x8] sm:$0xff]  ;;  %v5597_v19 = vunpack.c.l.bf16 %v4597_v15  ;;  %v5600_v20 = vunpack.c.l.bf16 %v4599_v16  ;;  %v5596_v22 = vunpack.c.h.bf16 %v4597_v15  ;;  %v5601_v26 = vunpack.c.h.bf16 %v4599_v16 }
  0xc6   :  { %5643 = vst [vmem:[#allocation30_spill] sm:$0xff] %v4591_v13  ;;  %3744 = vmatpush3.bf16.msra.mxu0 %v3741_v3  ;;  %v5599_v14 = vunpack.c.l.bf16 %v4591_v13  ;;  %3823 = vmatpush3.bf16.msra.mxu1 %v3749_v7  ;;  %v5598_v17 = vunpack.c.h.bf16 %v4591_v13  ;;  %v4604_v21 = vld [vmem:[#allocation5 + $0x20] sm:$0xff]   ;;  %v4615_v24 = vld [vmem:[#allocation5 + $0x8] sm:$0xff]   ;;  %v4632_v30 = vld [vmem:[#allocation5 + $0x30] sm:$0xff]   ;;  %v682_v1 = vunpack.c.0.s8 %v681_v63  ;;  %vm1244_vm6 = vcmask 1045509  }
  0xc7   :  { %3746 = vmatprep.subr.bf16.mxu0 %v3745_v8  ;;  %3822 = vmatprep.subr.bf16.mxu1 %v3753_v12  ;;  %5646 = vst [vmem:[#allocation33_spill] sm:$0xff] %v4604_v21  ;;  %v5595_v23 = vunpack.c.l.bf16 %v4604_v21  ;;  %5647 = vst [vmem:[#allocation34_spill] sm:$0xff] %v4615_v24  ;;  %v4620_v25 = vld [vmem:[#allocation5 + $0x28] sm:$0xff]   ;;  %v5594_v27 = vunpack.c.h.bf16 %v4604_v21  ;;  %v5603_v28 = vunpack.c.l.bf16 %v4615_v24  ;;  %v5602_v31 = vunpack.c.h.bf16 %v4615_v24  ;;  %v4649_v34 = vld [vmem:[#allocation5 + $0x38] sm:$0xff]  }
  0xc8   :  { %3591 = vmatprep.mubr.msk.f32.mxu1 %vm270_vm0, %v5599_v14  ;;  %5648 = vst [vmem:[#allocation35_spill] sm:$0xff] %v4620_v25  ;;  %v5593_v29 = vunpack.c.l.bf16 %v4620_v25  ;;  %5649 = vst [vmem:[#allocation36_spill] sm:$0xff] %v4632_v30  ;;  %v5592_v32 = vunpack.c.h.bf16 %v4620_v25  ;;  %v5591_v33 = vunpack.c.l.bf16 %v4632_v30  ;;  %v5590_v35 = vunpack.c.h.bf16 %v4632_v30  ;;  %v4662_v37 = vld [vmem:[#allocation5 + $0x40] sm:$0xff]   ;;  %v4672_v40 = vld [vmem:[#allocation5 + $0x48] sm:$0xff]  }
  0xc9   :  { %5650 = vst [vmem:[#allocation37_spill] sm:$0xff] %v4649_v34  ;;  %v5589_v36 = vunpack.c.l.bf16 %v4649_v34  ;;  %5651 = vst [vmem:[#allocation38_spill] sm:$0xff] %v4662_v37  ;;  %v5588_v38 = vunpack.c.h.bf16 %v4649_v34  ;;  %v5585_v39 = vunpack.c.l.bf16 %v4662_v37  ;;  %v5584_v41 = vunpack.c.h.bf16 %v4662_v37  ;;  %v4682_v43 = vld [vmem:[#allocation5 + $0x50] sm:$0xff]   ;;  %v4692_v46 = vld [vmem:[#allocation5 + $0x58] sm:$0xff]  }
  0xca   :  { %3748 = vmatpush3.bf16.msra.mxu0 %v3745_v8  ;;  %3824 = vmatpush3.bf16.msra.mxu1 %v3753_v12  ;;  %5652 = vst [vmem:[#allocation39_spill] sm:$0xff] %v4672_v40  ;;  %v5587_v42 = vunpack.c.l.bf16 %v4672_v40  ;;  %5653 = vst [vmem:[#allocation40_spill] sm:$0xff] %v4682_v43  ;;  %v5586_v44 = vunpack.c.h.bf16 %v4672_v40  ;;  %v5583_v45 = vunpack.c.l.bf16 %v4682_v43  ;;  %v5582_v47 = vunpack.c.h.bf16 %v4682_v43  ;;  %v4702_v49 = vld [vmem:[#allocation5 + $0x60] sm:$0xff]   ;;  %v4712_v52 = vld [vmem:[#allocation5 + $0x68] sm:$0xff]  }
  0xcb   :  { %3750 = vmatprep.subr.bf16.mxu0 %v3749_v7  ;;  %5654 = vst [vmem:[#allocation41_spill] sm:$0xff] %v4692_v46  ;;  %v5581_v48 = vunpack.c.l.bf16 %v4692_v46  ;;  %5655 = vst [vmem:[#allocation42_spill] sm:$0xff] %v4702_v49  ;;  %v5580_v50 = vunpack.c.h.bf16 %v4692_v46  ;;  %v5579_v51 = vunpack.c.l.bf16 %v4702_v49  ;;  %v5578_v53 = vunpack.c.h.bf16 %v4702_v49  ;;  %v4722_v55 = vld [vmem:[#allocation5 + $0x70] sm:$0xff]   ;;  %v4732_v58 = vld [vmem:[#allocation5 + $0x78] sm:$0xff]  }
  0xcc   :  { %5656 = vst [vmem:[#allocation43_spill] sm:$0xff] %v4712_v52  ;;  %v5577_v54 = vunpack.c.l.bf16 %v4712_v52  ;;  %5657 = vst [vmem:[#allocation44_spill] sm:$0xff] %v4722_v55  ;;  %v5576_v56 = vunpack.c.h.bf16 %v4712_v52  ;;  %v5575_v57 = vunpack.c.l.bf16 %v4722_v55  ;;  %v5574_v59 = vunpack.c.h.bf16 %v4722_v55  ;;  %v3318_v3 = vld [vmem:[%s5555_s5] ss:$0 sm:$0xff] }
  0xcd   :  { %3575 = vmatmul.mubr.msk.f32.vlgmr.msra.gmra.mrb[0].mxu0 %vm270_vm0, %v194_v18  ;;  %3592 = vmatmul.mubr.msk.f32.vlgmr.msra.gmra.mrb[0].mxu1 %vm270_vm0, %v5598_v17  ;;  %5658 = vst [vmem:[#allocation45_spill] sm:$0xff] %v4732_v58  ;;  %v5573_v60 = vunpack.c.l.bf16 %v4732_v58  ;;  %v5572_v61 = vunpack.c.h.bf16 %v4732_v58  ;;  %v4759_v5 = vsub.s32 %v682_v1, %v4753_v2  ;;  %vm1246_vm7 = vcmask 1046534  }
  0xce   :  { %3752 = vmatpush3.bf16.msra.mxu0 %v3749_v7  ;;  %3594 = vmatprep.mubr.msk.f32.mxu1 %vm270_vm0, %v5597_v19  ;;  %vm1248_vm8 = vcmask 1047559   ;;  %vm1259_vm9 = vcmask 130048   ;;  %v5065_v46 = vsub.s32 6, %v4753_v2  ;;  %vm2304_vm10 = vcmask 64512  }
  0xcf   :  { %3754 = vmatprep.subr.bf16.mxu0 %v3753_v12  ;;  %3585 = vmatprep.mubr.msk.f32.mxu0 %vm270_vm0, %v5600_v20 }
  0xd1   :  { %3595 = vmatmul.mubr.msk.f32.gmra.mrb[2].mxu1 %vm270_vm0, %v5596_v22 }
  0xd2   :  { %3756 = vmatpush3.bf16.msra.mxu0 %v3753_v12  ;;  %3597 = vmatprep.mubr.msk.f32.mxu1 %vm270_vm0, %v5595_v23  ;;  %v4763_v12 = vsub.s32 0, %v4753_v2 }
  0xd5   :  { %3586 = vmatmul.mubr.msk.f32.vlgmr.msra.gmra.mrb[2].mxu0 %vm270_vm0, %v5601_v26  ;;  %3598 = vmatmul.mubr.msk.f32.gmra.mrb[4].mxu1 %vm270_vm0, %v5594_v27 }
  0xd6   :  { %3588 = vmatprep.mubr.msk.f32.mxu0 %vm270_vm0, %v5603_v28  ;;  %3600 = vmatprep.mubr.msk.f32.mxu1 %vm270_vm0, %v5593_v29 }
  0xd9   :  { %3589 = vmatmul.mubr.msk.f32.gmra.mrb[4].mxu0 %vm270_vm0, %v5602_v31  ;;  %3601 = vmatmul.mubr.msk.f32.gmra.mrb[6].mxu1 %vm270_vm0, %v5592_v32 }
  0xda   :  { %3603 = vmatprep.mubr.msk.f32.mxu1 %vm270_vm0, %v5591_v33 }
  0xdd   :  { %3604 = vmatmul.mubr.msk.f32.gmra.mrb[8].mxu1 %vm270_vm0, %v5590_v35 }
  0xde   :  { %3606 = vmatprep.mubr.msk.f32.mxu1 %vm270_vm0, %v5589_v36 }
  0xe1   :  { %3607 = vmatmul.mubr.msk.f32.gmra.mrb[10].mxu1 %vm270_vm0, %v5588_v38 }
  0xe2   :  { %3609 = vmatprep.mubr.msk.f32.mxu1 %vm270_vm0, %v5585_v39 }
  0xe5   :  { %3610 = vmatmul.mubr.msk.f32.gmra.mrb[12].mxu1 %vm270_vm0, %v5584_v41 }
  0xe6   :  { %3612 = vmatprep.mubr.msk.f32.mxu1 %vm270_vm0, %v5587_v42 }
  0xe9   :  { %3613 = vmatmul.mubr.msk.f32.gmra.mrb[14].mxu1 %vm270_vm0, %v5586_v44 }
  0xea   :  { %3615 = vmatprep.mubr.msk.f32.mxu1 %vm270_vm0, %v5583_v45 }
  0xed   :  { %3616 = vmatmul.mubr.msk.f32.gmra.mrb[16].mxu1 %vm270_vm0, %v5582_v47 }
  0xee   :  { %3618 = vmatprep.mubr.msk.f32.mxu1 %vm270_vm0, %v5581_v48 }
  0xf1   :  { %3619 = vmatmul.mubr.msk.f32.gmra.mrb[18].mxu1 %vm270_vm0, %v5580_v50 }
  0xf2   :  { %3621 = vmatprep.mubr.msk.f32.mxu1 %vm270_vm0, %v5579_v51 }
  0xf5   :  { %3622 = vmatmul.mubr.msk.f32.gmra.mrb[20].mxu1 %vm270_vm0, %v5578_v53 }
  0xf6   :  { %3624 = vmatprep.mubr.msk.f32.mxu1 %vm270_vm0, %v5577_v54 }
  0xf9   :  { %3625 = vmatmul.mubr.msk.f32.gmra.mrb[22].mxu1 %vm270_vm0, %v5576_v56 }
  0xfa   :  { %3627 = vmatprep.mubr.msk.f32.mxu1 %vm270_vm0, %v5575_v57 }
  0xfd   :  { %3628 = vmatmul.mubr.msk.f32.gmra.mrb[24].mxu1 %vm270_vm0, %v5574_v59 }
  0xfe   :  { %3630 = vmatprep.mubr.msk.f32.mxu1 %vm270_vm0, %v5573_v60 }
 0x101   :  { %3631 = vmatmul.mubr.msk.f32.gmra.mrb[26].mxu1 %vm270_vm0, %v5572_v61 }
 0x1a0   :  { %v3576_v4 = vpop.f32.mrb[0].mxu0  ;;  %v3593_v7 = vpop.f32.mrb[0].mxu1 }
 0x1a1   :  { %v343_v6 = vpop.f32.mrb[1].mxu0  ;;  %v538_v9 = vpop.f32.mrb[1].mxu1  ;;  %v4770_v54 = vadd.f32 %v3576_v4, %v3318_v3 }
 0x1a2   :  { %v344_v8 = vadd.f32 %v3318_v3, %v343_v6 }
 0x1a4   :  { %v679_v10 = vcombine.high %v344_v8, %v344_v8  ;;  %v686_v11 = vrot.slane %v344_v8, %v4759_v5  ;;  %v3596_v18 = vpop.f32.mrb[2].mxu1 }
 0x1a5   :  { %v548_v60 = vpop.f32.mrb[3].mxu1 }
 0x1a6   :  { %v693_v62 = vrot.slane %v679_v10, %v4759_v5  ;;  %v694_v63 = vcombine.high %v686_v11, %v686_v11  ;;  %v702_v61 = vrot.slane %v686_v11, %v4759_v5 }
 0x1a8   :  { %v724_v59 = vcombine.high %v702_v61, %v702_v61  ;;  %v3587_v1 = vpop.f32.mrb[2].mxu0  ;;  %v780_v57 = vrot.slane %v702_v61, %v4763_v12  ;;  %v716_v6 = vrot.slane %v694_v63, %v4759_v5  ;;  %v709_v56 = vrot.slane %v693_v62, %v4759_v5  ;;  %v3599_v53 = vpop.f32.mrb[4].mxu1 }
 0x1a9   :  { %v518_v8 = vpop.f32.mrb[3].mxu0  ;;  %v695_v51 = vcombine.high %v693_v62, %v693_v62  ;;  %v558_v11 = vpop.f32.mrb[5].mxu1 }
 0x1aa   :  { %v788_v50 = vrot.slane %v724_v59, %v4763_v12  ;;  %v858_v10 = vadd.f32 %v3587_v1, %v780_v57  ;;  %v726_v48 = vcombine.high %v716_v6, %v716_v6  ;;  %v857_v47 = vadd.f32 %v780_v57, %v518_v8 }
 0x1ab   :  { %v796_v45 = vrot.slane %v709_v56, %v4763_v12  ;;  %v784_v41 = vrot.slane %v716_v6, %v4763_v12  ;;  %v723_v61 = vrot.slane %v695_v51, %v4759_v5  ;;  %v725_v63 = vcombine.high %v709_v56, %v709_v56 }
 0x1ac   :  { %v862_v39 = vadd.f32 %v3593_v7, %v788_v50  ;;  %v861_v44 = vadd.f32 %v788_v50, %v538_v9  ;;  %3869 = vtanh.f32 %v858_v10  ;;  %v792_v3 = vrot.slane %v726_v48, %v4763_v12  ;;  %v3590_v4 = vpop.f32.mrb[4].mxu0  ;;  %v3602_v42 = vpop.f32.mrb[6].mxu1 }
 0x1ad   :  { %3871 = vtanh.f32 %v857_v47  ;;  %v866_v62 = vadd.f32 %v3599_v53, %v796_v45  ;;  %v865_v59 = vadd.f32 %v796_v45, %v558_v11  ;;  %v860_v1 = vadd.f32 %v3590_v4, %v784_v41  ;;  %v528_v57 = vpop.f32.mrb[5].mxu0  ;;  %v568_v36 = vpop.f32.mrb[7].mxu1 }
 0x1ae   :  { %3873 = vtanh.f32 %v862_v39  ;;  %v864_v8 = vadd.f32 %v3596_v18, %v792_v3  ;;  %v863_v38 = vadd.f32 %v792_v3, %v548_v60  ;;  %v800_v6 = vrot.slane %v723_v61, %v4763_v12 }
 0x1af   :  { %v735_v51 = vrot.slane %v4770_v54, %v4759_v5  ;;  %v859_v50 = vadd.f32 %v784_v41, %v528_v57  ;;  %v804_v48 = vrot.slane %v725_v63, %v4763_v12  ;;  %v727_v47 = vcombine.high %v723_v61, %v723_v61  ;;  %v4783_v41 = vld [vmem:[#allocation8] ss:$0 sm:$0xff] }
 0x1b0   :  { %v868_v56 = vadd.f32 %v3602_v42, %v800_v6  ;;  %v867_v7 = vadd.f32 %v800_v6, %v568_v36  ;;  %3875 = vtanh.f32 %v861_v44  ;;  %v3605_v45 = vpop.f32.mrb[8].mxu1 }
 0x1b1   :  { %3877 = vtanh.f32 %v866_v62  ;;  %v870_v53 = vadd.f32 %v3605_v45, %v804_v48  ;;  %v578_v9 = vpop.f32.mrb[9].mxu1  ;;  %v743_v18 = vcombine.high %v735_v51, %v735_v51  ;;  %v808_v60 = vrot.slane %v727_v47, %v4763_v12 }
 0x1b2   :  { %v869_v39 = vadd.f32 %v804_v48, %v578_v9  ;;  %3879 = vtanh.f32 %v860_v1  ;;  %v751_v10 = vrot.slane %v735_v51, %v4759_v5 }
 0x1b3   :  { %3881 = vtanh.f32 %v865_v59  ;;  %v765_v1 = vrot.slane %v743_v18, %v4759_v5 }
 0x1b4   :  { %v3608_v11 = vpop.f32.mrb[10].mxu1  ;;  %3883 = vtanh.f32 %v859_v50  ;;  %v812_v4 = vrot.slane %v751_v10, %v4763_v12 }
 0x1b5   :  { %v872_v42 = vadd.f32 %v3608_v11, %v808_v60  ;;  %v588_v61 = vpop.f32.mrb[11].mxu1  ;;  %3885 = vtanh.f32 %v863_v38  ;;  %v728_v38 = vcombine.high %v4770_v54, %v4770_v54  ;;  %v816_v18 = vrot.slane %v765_v1, %v4763_v12 }
 0x1b6   :  { %v3870_v36 = vpop.eup %3869  ;;  %v871_v63 = vadd.f32 %v808_v60, %v588_v61  ;;  %3887 = vtanh.f32 %v864_v8  ;;  %v773_v8 = vcombine.high %v751_v10, %v751_v10 }
 0x1b7   :  { %v3872_v44 = vpop.eup %3871  ;;  %v929_v48 = vmul.f32 %v3870_v36, %v4783_v41  ;;  %3889 = vtanh.f32 %v867_v7 }
 0x1b8   :  { %v3874_v3 = vpop.eup %3873  ;;  %v928_v62 = vmul.f32 %v3872_v44, %v4783_v41  ;;  %v3611_v57 = vpop.f32.mrb[12].mxu1  ;;  %3891 = vtanh.f32 %v868_v56  ;;  %v775_v56 = vcombine.high %v765_v1, %v765_v1 }
 0x1b9   :  { %v933_v59 = vmul.f32 %v3874_v3, %v4783_v41  ;;  %v4789_v6 = vadd.f32 %v3611_v57, %v812_v4  ;;  %v598_v51 = vpop.f32.mrb[13].mxu1  ;;  %3893 = vtanh.f32 %v869_v39 }
 0x1ba   :  { %v960_v50 = vsel %vm270_vm0, %v928_v62, 0.0  ;;  %v3876_v47 = vpop.eup %3875  ;;  %v873_v45 = vadd.f32 %v812_v4, %v598_v51  ;;  %v963_v4 = vsel %vm270_vm0, %v929_v48, 0.0  ;;  %v742_v51 = vrot.slane %v728_v38, %v4759_v5 }
 0x1bb   :  { %961 = vadd.xlane.f32.xlu0 %v960_v50  ;;  %v975_v9 = vsel %vm270_vm0, %v933_v59, 0.0  ;;  %v3878_v60 = vpop.eup %3877  ;;  %v932_v62 = vmul.f32 %v3876_v47, %v4783_v41  ;;  %v820_v50 = vrot.slane %v773_v8, %v4763_v12  ;;  %3895 = vtanh.f32 %v870_v53 }
 0x1bc   :  { %976 = vadd.xlane.f32.xlu1 %v975_v9  ;;  %v3614_v11 = vpop.f32.mrb[14].mxu1  ;;  %v937_v61 = vmul.f32 %v3878_v60, %v4783_v41  ;;  %v3880_v44 = vpop.eup %3879  ;;  %v824_v1 = vrot.slane %v775_v56, %v4763_v12  ;;  %v758_v53 = vrot.slane %v742_v51, %v4759_v5  ;;  %v744_v39 = vcombine.high %v742_v51, %v742_v51 }
 0x1bd   :  { %v4798_v36 = vadd.f32 %v3614_v11, %v816_v18  ;;  %v608_v3 = vpop.f32.mrb[15].mxu1  ;;  %v3882_v57 = vpop.eup %3881  ;;  %v931_v10 = vmul.f32 %v3880_v44, %v4783_v41  ;;  %v972_v60 = vsel %vm270_vm0, %v932_v62, 0.0  ;;  %3897 = vtanh.f32 %v871_v63 }
 0x1be   :  { %v875_v59 = vadd.f32 %v816_v18, %v608_v3  ;;  %v987_v54 = vsel %vm270_vm0, %v937_v61, 0.0  ;;  %v3884_v7 = vpop.eup %3883  ;;  %v936_v18 = vmul.f32 %v3882_v57, %v4783_v41  ;;  %3899 = vtanh.f32 %v872_v42 }
 0x1bf   :  { %964 = vadd.xlane.f32.xlu0 %v963_v4  ;;  %v3886_v11 = vpop.eup %3885  ;;  %v969_v44 = vsel %vm270_vm0, %v931_v10, 0.0  ;;  %v930_v38 = vmul.f32 %v3884_v7, %v4783_v41  ;;  %v772_v63 = vrot.slane %v744_v39, %v4759_v5  ;;  %3901 = vtanh.f32 %v873_v45 }
 0x1c0   :  { %988 = vadd.xlane.f32.xlu1 %v987_v54  ;;  %v3617_v9 = vpop.f32.mrb[16].mxu1  ;;  %v3888_v8 = vpop.eup %3887  ;;  %v984_v57 = vsel %vm270_vm0, %v936_v18, 0.0  ;;  %v934_v54 = vmul.f32 %v3886_v11, %v4783_v41  ;;  %3903 = vtanh.f32 %v4789_v6  ;;  %v774_v45 = vcombine.high %v758_v53, %v758_v53 }
 0x1c1   :  { %v4806_v48 = vadd.f32 %v3617_v9, %v820_v50  ;;  %v618_v47 = vpop.f32.mrb[17].mxu1  ;;  %v966_v7 = vsel %vm270_vm0, %v930_v38, 0.0  ;;  %v935_v56 = vmul.f32 %v3888_v8, %v4783_v41  ;;  %v832_v5 = vrot.slane %v772_v63, %v4763_v12 }
 0x1c2   :  { %v877_v61 = vadd.f32 %v820_v50, %v618_v47  ;;  %v3890_v50 = vpop.eup %3889  ;;  %v828_v47 = vrot.slane %v758_v53, %v4763_v12  ;;  %v978_v18 = vsel %vm270_vm0, %v934_v54, 0.0  ;;  %3905 = vtanh.f32 %v875_v59 }
 0x1c3   :  { %973 = vadd.xlane.f32.xlu0 %v972_v60  ;;  %v3892_v9 = vpop.eup %3891  ;;  %v938_v11 = vmul.f32 %v3890_v50, %v4783_v41  ;;  %v981_v8 = vsel %vm270_vm0, %v935_v56, 0.0  ;;  %3907 = vtanh.f32 %v4798_v36  ;;  %v836_v53 = vrot.slane %v774_v45, %v4763_v12 }
 0x1c4   :  { %970 = vadd.xlane.f32.xlu1 %v969_v44  ;;  %v3620_v3 = vpop.f32.mrb[18].mxu1  ;;  %v3894_v44 = vpop.eup %3893  ;;  %v776_v59 = vcombine.high %v772_v63, %v772_v63  ;;  %3909 = vtanh.f32 %v877_v61 }
 0x1c5   :  { %v880_v4 = vadd.f32 %v3620_v3, %v824_v1  ;;  %v628_v62 = vpop.f32.mrb[19].mxu1  ;;  %v3896_v3 = vpop.eup %3895  ;;  %v940_v54 = vmul.f32 %v3894_v44, %v4783_v41  ;;  %3911 = vtanh.f32 %v4806_v48 }
 0x1c6   :  { %v879_v10 = vadd.f32 %v824_v1, %v628_v62  ;;  %v939_v1 = vmul.f32 %v3892_v9, %v4783_v41  ;;  %v941_v9 = vmul.f32 %v3896_v3, %v4783_v41  ;;  %v840_v63 = vrot.slane %v776_v59, %v4763_v12 }
 0x1c7   :  { %985 = vadd.xlane.f32.xlu0 %v984_v57  ;;  %v990_v57 = vsel %vm270_vm0, %v938_v11, 0.0  ;;  %v3898_v50 = vpop.eup %3897 }
 0x1c8   :  { %967 = vadd.xlane.f32.xlu1 %v966_v7  ;;  %v3623_v42 = vpop.f32.mrb[20].mxu1  ;;  %v993_v56 = vsel %vm270_vm0, %v939_v1, 0.0  ;;  %v942_v11 = vmul.f32 %v3898_v50, %v4783_v41  ;;  %v999_v1 = vsel %vm270_vm0, %v941_v9, 0.0  ;;  %3913 = vtanh.f32 %v879_v10 }
 0x1c9   :  { %v882_v51 = vadd.f32 %v3623_v42, %v828_v47  ;;  %v638_v60 = vpop.f32.mrb[21].mxu1  ;;  %3915 = vtanh.f32 %v880_v4 }
 0x1ca   :  { %v881_v38 = vadd.f32 %v828_v47, %v638_v60  ;;  %v3900_v47 = vpop.eup %3899 }
 0x1cb   :  { %979 = vadd.xlane.f32.xlu0 %v978_v18  ;;  %v996_v18 = vsel %vm270_vm0, %v940_v54, 0.0  ;;  %v3902_v44 = vpop.eup %3901  ;;  %v943_v3 = vmul.f32 %v3900_v47, %v4783_v41 }
 0x1cc   :  { %982 = vadd.xlane.f32.xlu1 %v981_v8  ;;  %v3626_v6 = vpop.f32.mrb[22].mxu1  ;;  %3917 = vtanh.f32 %v881_v38 }
 0x1cd   :  { %v884_v39 = vadd.f32 %v3626_v6, %v832_v5  ;;  %v648_v62 = vpop.f32.mrb[23].mxu1  ;;  %v1002_v6 = vsel %vm270_vm0, %v942_v11, 0.0  ;;  %v1005_v50 = vsel %vm270_vm0, %v943_v3, 0.0  ;;  %3919 = vtanh.f32 %v882_v51 }
 0x1ce   :  { %v883_v7 = vadd.f32 %v832_v5, %v648_v62  ;;  %v3904_v5 = vpop.eup %3903  ;;  %v944_v62 = vmul.f32 %v3902_v44, %v4783_v41 }
 0x1cf   :  { %991 = vadd.xlane.f32.xlu0 %v990_v57  ;;  %v3906_v57 = vpop.eup %3905 }
 0x1d0   :  { %994 = vadd.xlane.f32.xlu1 %v993_v56  ;;  %v3629_v36 = vpop.f32.mrb[24].mxu1  ;;  %v945_v56 = vmul.f32 %v3904_v5, %v4783_v41  ;;  %v3908_v9 = vpop.eup %3907  ;;  %v1008_v10 = vsel %vm270_vm0, %v944_v62, 0.0  ;;  %v946_v4 = vmul.f32 %v3906_v57, %v4783_v41  ;;  %3921 = vtanh.f32 %v883_v7 }
 0x1d1   :  { %v886_v42 = vadd.f32 %v3629_v36, %v836_v53  ;;  %v658_v60 = vpop.f32.mrb[25].mxu1  ;;  %v3910_v47 = vpop.eup %3909  ;;  %v947_v59 = vmul.f32 %v3908_v9, %v4783_v41  ;;  %3923 = vtanh.f32 %v884_v39 }
 0x1d2   :  { %v885_v8 = vadd.f32 %v836_v53, %v658_v60  ;;  %v1011_v53 = vsel %vm270_vm0, %v945_v56, 0.0  ;;  %v3912_v36 = vpop.eup %3911  ;;  %v1014_v60 = vsel %vm270_vm0, %v946_v4, 0.0 }
 0x1d3   :  { %997 = vadd.xlane.f32.xlu0 %v996_v18  ;;  %v948_v18 = vmul.f32 %v3910_v47, %v4783_v41  ;;  %v3914_v38 = vpop.eup %3913  ;;  %v1017_v51 = vsel %vm270_vm0, %v947_v59, 0.0  ;;  %v949_v11 = vmul.f32 %v3912_v36, %v4783_v41 }
 0x1d4   :  { %1000 = vadd.xlane.f32.xlu1 %v999_v1  ;;  %v3632_v61 = vpop.f32.mrb[26].mxu1  ;;  %v3916_v44 = vpop.eup %3915  ;;  %3925 = vtanh.f32 %v885_v8  ;;  %v950_v3 = vmul.f32 %v3914_v38, %v4783_v41 }
 0x1d5   :  { %v888_v48 = vadd.f32 %v3632_v61, %v840_v63  ;;  %v668_v45 = vpop.f32.mrb[27].mxu1  ;;  %3927 = vtanh.f32 %v886_v42  ;;  %v1020_v1 = vsel %vm270_vm0, %v948_v18, 0.0  ;;  %v1023_v39 = vsel %vm270_vm0, %v949_v11, 0.0 }
 0x1d6   :  { %v887_v54 = vadd.f32 %v840_v63, %v668_v45  ;;  %v3918_v7 = vpop.eup %3917  ;;  %v951_v5 = vmul.f32 %v3916_v44, %v4783_v41  ;;  %v1026_v61 = vsel %vm270_vm0, %v950_v3, 0.0 }
 0x1d7   :  { %1003 = vadd.xlane.f32.xlu0 %v1002_v6  ;;  %v3920_v63 = vpop.eup %3919  ;;  %v952_v45 = vmul.f32 %v3918_v7, %v4783_v41 }
 0x1d8   :  { %1006 = vadd.xlane.f32.xlu1 %v1005_v50  ;;  %3929 = vtanh.f32 %v887_v54  ;;  %v1029_v42 = vsel %vm270_vm0, %v951_v5, 0.0  ;;  %v953_v6 = vmul.f32 %v3920_v63, %v4783_v41  ;;  %v1089_v5 = vand.u32 127, %v683_v0 }
 0x1d9   :  { %3931 = vtanh.f32 %v888_v48  ;;  %v1032_v57 = vsel %vm270_vm0, %v952_v45, 0.0 }
 0x1da   :  { %v3922_v8 = vpop.eup %3921  ;;  %v1035_v48 = vsel %vm270_vm0, %v953_v6, 0.0 }
 0x1db   :  { %1009 = vadd.xlane.f32.xlu0 %v1008_v10  ;;  %v3924_v62 = vpop.eup %3923  ;;  %v954_v50 = vmul.f32 %v3922_v8, %v4783_v41 }
 0x1dc   :  { %1012 = vadd.xlane.f32.xlu1 %v1011_v53  ;;  %v955_v54 = vmul.f32 %v3924_v62, %v4783_v41 }
 0x1dd   :  { %v1038_v10 = vsel %vm270_vm0, %v954_v50, 0.0 }
 0x1de   :  { %v3926_v56 = vpop.eup %3925  ;;  %v1041_v53 = vsel %vm270_vm0, %v955_v54, 0.0 }
 0x1df   :  { %1015 = vadd.xlane.f32.xlu0 %v1014_v60  ;;  %v3928_v9 = vpop.eup %3927  ;;  %v956_v4 = vmul.f32 %v3926_v56, %v4783_v41 }
 0x1e0   :  { %1018 = vadd.xlane.f32.xlu1 %v1017_v51  ;;  %v957_v59 = vmul.f32 %v3928_v9, %v4783_v41 }
 0x1e1   :  { %v1044_v60 = vsel %vm270_vm0, %v956_v4, 0.0 }
 0x1e2   :  { %v3930_v47 = vpop.eup %3929  ;;  %v1047_v38 = vsel %vm270_vm0, %v957_v59, 0.0 }
 0x1e3   :  { %1021 = vadd.xlane.f32.xlu0 %v1020_v1  ;;  %v3932_v36 = vpop.eup %3931  ;;  %v958_v18 = vmul.f32 %v3930_v47, %v4783_v41 }
 0x1e4   :  { %1024 = vadd.xlane.f32.xlu1 %v1023_v39  ;;  %v959_v51 = vmul.f32 %v3932_v36, %v4783_v41 }
 0x1e5   :  { %v1050_v11 = vsel %vm270_vm0, %v958_v18, 0.0 }
 0x1e6   :  { %v1053_v44 = vsel %vm270_vm0, %v959_v51, 0.0 }
 0x1e7   :  { %1027 = vadd.xlane.f32.xlu0 %v1026_v61  ;;  %v1094_v61 = vadd.s32 4294967288, %v1089_v5 }
 0x1e8   :  { %1030 = vadd.xlane.f32.xlu1 %v1029_v42  ;;  %v4890_v42 = vsub.s32 %v1089_v5, %v4753_v2 }
 0x1e9   :  { %v4893_v6 = vsub.s32 %v1094_v61, %v4753_v2 }
 0x1eb   :  { %1033 = vadd.xlane.f32.xlu0 %v1032_v57 }
 0x1ec   :  { %1036 = vadd.xlane.f32.xlu1 %v1035_v48 }
 0x1ef   :  { %1039 = vadd.xlane.f32.xlu0 %v1038_v10 }
 0x1f0   :  { %1042 = vadd.xlane.f32.xlu1 %v1041_v53 }
 0x1f3   :  { %1045 = vadd.xlane.f32.xlu0 %v1044_v60 }
 0x1f4   :  { %1048 = vadd.xlane.f32.xlu1 %v1047_v38 }
 0x1f7   :  { %1051 = vadd.xlane.f32.xlu0 %v1050_v11 }
 0x1f8   :  { %1054 = vadd.xlane.f32.xlu1 %v1053_v44 }
 0x248   :  { %v4872_v1 = vpop.xlane.xlu0 %961 }
 0x249   :  { %v4874_v3 = vpop.xlane.xlu1 %976  ;;  %v1093_v48 = vrot.slane %v4872_v1, %v4890_v42 }
 0x24a   :  { %v1117_v36 = vrot.slane %v4874_v3, %v4893_v6 }
 0x24c   :  { %v4876_v7 = vpop.xlane.xlu0 %964 }
 0x24d   :  { %v4878_v39 = vpop.xlane.xlu1 %988  ;;  %v1098_v50 = vrot.slane %v4876_v7, %v4893_v6 }
 0x24f   :  { %v1100_v53 = vsel %vm1099_vm1, %v1098_v50, %v1093_v48 }
 0x250   :  { %v4881_v63 = vpop.xlane.xlu0 %973 }
 0x251   :  { %v4883_v41 = vpop.xlane.xlu1 %970  ;;  %v1113_v4 = vrot.slane %v4881_v63, %v4890_v42 }
 0x252   :  { %v1108_v56 = vrot.slane %v4883_v41, %v4893_v6 }
 0x253   :  { %v1118_v11 = vsel %vm1099_vm1, %v1117_v36, %v1113_v4 }
 0x254   :  { %v4885_v45 = vpop.xlane.xlu0 %985 }
 0x255   :  { %v4887_v8 = vpop.xlane.xlu1 %967  ;;  %v1131_v44 = vrot.slane %v4885_v45, %v4890_v42 }
 0x256   :  { %v1104_v62 = vrot.slane %v4887_v8, %v4890_v42 }
 0x258   :  { %v4897_v57 = vpop.xlane.xlu0 %979  ;;  %v1109_v54 = vsel %vm1099_vm1, %v1108_v56, %v1104_v62  ;;  %v1135_v56 = vrot.slane %v4878_v39, %v4893_v6 }
 0x259   :  { %v4899_v0 = vpop.xlane.xlu1 %982  ;;  %v1122_v59 = vrot.slane %v4897_v57, %v4890_v42  ;;  %v1237_v60 = vsel %vm1236_vm2, %v1109_v54, %v1100_v53 }
 0x25a   :  { %v1126_v9 = vrot.slane %v4899_v0, %v4893_v6  ;;  %v1239_v61 = vsel %vm1238_vm3, %v1118_v11, %v1237_v60  ;;  %v1136_v53 = vsel %vm1099_vm1, %v1135_v56, %v1131_v44 }
 0x25c   :  { %v4910_v10 = vpop.xlane.xlu0 %991  ;;  %v1127_v18 = vsel %vm1099_vm1, %v1126_v9, %v1122_v59 }
 0x25d   :  { %v4914_v47 = vpop.xlane.xlu1 %994  ;;  %v1140_v62 = vrot.slane %v4910_v10, %v4890_v42  ;;  %v1241_v48 = vsel %vm1240_vm4, %v1127_v18, %v1239_v61 }
 0x25e   :  { %v1144_v38 = vrot.slane %v4914_v47, %v4893_v6  ;;  %v1243_v11 = vsel %vm1242_vm5, %v1136_v53, %v1241_v48 }
 0x260   :  { %v4925_v51 = vpop.xlane.xlu0 %997  ;;  %v1145_v9 = vsel %vm1099_vm1, %v1144_v38, %v1140_v62 }
 0x261   :  { %v4930_v5 = vpop.xlane.xlu1 %1000  ;;  %v1149_v54 = vrot.slane %v4925_v51, %v4890_v42  ;;  %v1245_v38 = vsel %vm1244_vm6, %v1145_v9, %v1243_v11 }
 0x262   :  { %v1153_v50 = vrot.slane %v4930_v5, %v4893_v6 }
 0x264   :  { %v4943_v4 = vpop.xlane.xlu0 %1003  ;;  %v1154_v36 = vsel %vm1099_vm1, %v1153_v50, %v1149_v54 }
 0x265   :  { %v4946_v59 = vpop.xlane.xlu1 %1006  ;;  %v1158_v60 = vrot.slane %v4943_v4, %v4890_v42  ;;  %v1247_v62 = vsel %vm1246_vm7, %v1154_v36, %v1245_v38 }
 0x266   :  { %v1162_v18 = vrot.slane %v4946_v59, %v4893_v6 }
 0x268   :  { %v4955_v61 = vpop.xlane.xlu0 %1009  ;;  %v1163_v44 = vsel %vm1099_vm1, %v1162_v18, %v1158_v60 }
 0x269   :  { %v4959_v50 = vpop.xlane.xlu1 %1012  ;;  %v1249_v56 = vsel %vm1248_vm8, %v1163_v44, %v1247_v62  ;;  %v1167_v23 = vrot.slane %v4955_v61, %v4890_v42 }
 0x26a   :  { %v1260_v54 = vsel %vm1259_vm9, %v1249_v56, -inf }
 0x26b   :  { %1261 = vmax.xlane.f32.xlu0 %v1260_v54  ;;  %v1171_v54 = vrot.slane %v4959_v50, %v4893_v6 }
 0x26c   :  { %v4963_v35 = vpop.xlane.xlu0 %1015 }
 0x26d   :  { %v4965_v48 = vpop.xlane.xlu1 %1018  ;;  %v1176_v33 = vrot.slane %v4963_v35, %v4890_v42  ;;  %v1172_v28 = vsel %vm1099_vm1, %v1171_v54, %v1167_v23 }
 0x26e   :  { %v1180_v38 = vrot.slane %v4965_v48, %v4893_v6 }
 0x270   :  { %v4967_v53 = vpop.xlane.xlu0 %1021  ;;  %v1181_v22 = vsel %vm1099_vm1, %v1180_v38, %v1176_v33 }
 0x271   :  { %v4969_v9 = vpop.xlane.xlu1 %1024  ;;  %v1185_v29 = vrot.slane %v4967_v53, %v4890_v42  ;;  %v1250_v55 = vsel %vm1236_vm2, %v1181_v22, %v1172_v28 }
 0x272   :  { %v1189_v62 = vrot.slane %v4969_v9, %v4893_v6 }
 0x274   :  { %v4971_v11 = vpop.xlane.xlu0 %1027  ;;  %v1190_v20 = vsel %vm1099_vm1, %v1189_v62, %v1185_v29 }
 0x275   :  { %v4973_v60 = vpop.xlane.xlu1 %1030  ;;  %v1194_v19 = vrot.slane %v4971_v11, %v4890_v42  ;;  %v1251_v62 = vsel %vm1238_vm3, %v1190_v20, %v1250_v55 }
 0x276   :  { %v1198_v32 = vrot.slane %v4973_v60, %v4893_v6 }
 0x278   :  { %v4975_v36 = vpop.xlane.xlu0 %1033  ;;  %v1199_v58 = vsel %vm1099_vm1, %v1198_v32, %v1194_v19 }
 0x279   :  { %v4977_v18 = vpop.xlane.xlu1 %1036  ;;  %v1203_v26 = vrot.slane %v4975_v36, %v4890_v42  ;;  %v1252_v19 = vsel %vm1240_vm4, %v1199_v58, %v1251_v62 }
 0x27a   :  { %v1207_v27 = vrot.slane %v4977_v18, %v4893_v6 }
 0x27c   :  { %v4981_v44 = vpop.xlane.xlu0 %1039  ;;  %v1208_v52 = vsel %vm1099_vm1, %v1207_v27, %v1203_v26 }
 0x27d   :  { %v4985_v56 = vpop.xlane.xlu1 %1042  ;;  %v1212_v33 = vrot.slane %v4981_v44, %v4890_v42  ;;  %v1253_v27 = vsel %vm1242_vm5, %v1208_v52, %v1252_v19 }
 0x27e   :  { %v1216_v17 = vrot.slane %v4985_v56, %v4893_v6 }
 0x280   :  { %v5004_v14 = vpop.xlane.xlu0 %1045  ;;  %v1217_v49 = vsel %vm1099_vm1, %v1216_v17, %v1212_v33  ;;  %v4312_v33 = vmov 0  }
 0x281   :  { %v5009_v31 = vpop.xlane.xlu1 %1048  ;;  %v1221_v29 = vrot.slane %v5004_v14, %v4890_v42  ;;  %v1254_v20 = vsel %vm1244_vm6, %v1217_v49, %v1253_v27  ;;  %3868 = vset.pattern.permute.xlu1 %v4312_v33  ;;  %3867 = vset.pattern.permute.xlu0 %v4312_v33  ;;  %v5054_v27 = vsub.s32 2, %v4753_v2 }
 0x282   :  { %v1225_v38 = vrot.slane %v5009_v31, %v4893_v6 }
 0x284   :  { %v5023_v23 = vpop.xlane.xlu0 %1051  ;;  %v1226_v54 = vsel %vm1099_vm1, %v1225_v38, %v1221_v29  ;;  %v5040_v38 = vsub.s32 1, %v4753_v2  ;;  %v5043_v29 = vsub.s32 3, %v4753_v2 }
 0x285   :  { %v5026_v32 = vpop.xlane.xlu1 %1054  ;;  %v1230_v22 = vrot.slane %v5023_v23, %v4890_v42  ;;  %v1255_v28 = vsel %vm1246_vm7, %v1226_v54, %v1254_v20 }
 0x286   :  { %v1234_v26 = vrot.slane %v5026_v32, %v4893_v6 }
 0x288   :  { %v1235_v17 = vsel %vm1099_vm1, %v1234_v26, %v1230_v22  ;;  %v5050_v22 = vsub.s32 4, %v4753_v2 }
 0x289   :  { %v1256_v55 = vsel %vm1248_vm8, %v1235_v17, %v1255_v28 }
 0x28a   :  { %v1263_v58 = vsel %vm1259_vm9, %v1256_v55, -inf  ;;  %v5058_v55 = vsub.s32 5, %v4753_v2 }
 0x28b   :  { %1264 = vmax.xlane.f32.xlu1 %v1263_v58 }
 0x2f8   :  { %v1262_v52 = vpop.xlane.xlu0 %1261 }
 0x2f9   :  { %v1271_v49 = vrot.slane %v1262_v52, %v4763_v12  ;;  %v1275_v62 = vrot.slane %v1262_v52, %v5040_v38  ;;  %v1283_v26 = vrot.slane %v1262_v52, %v5043_v29  ;;  %v1287_v58 = vrot.slane %v1262_v52, %v5050_v22 }
 0x2fb   :  { %v1348_v19 = vsub.f32 %v4872_v1, %v1271_v49  ;;  %v1349_v54 = vsub.f32 %v4876_v7, %v1271_v49  ;;  %v1350_v20 = vsub.f32 %v4887_v8, %v1275_v62  ;;  %v1355_v1 = vsub.f32 %v4899_v0, %v1283_v26 }
 0x2fc   :  { %v1279_v7 = vrot.slane %v1262_v52, %v5054_v27  ;;  %v1351_v33 = vsub.f32 %v4883_v41, %v1275_v62  ;;  %v1291_v8 = vrot.slane %v1262_v52, %v5058_v55  ;;  %v5071_v0 = vsub.s32 7, %v4753_v2 }
 0x2fd   :  { %v1380_v17 = vmul.f32 1.442695, %v1348_v19  ;;  %v1382_v28 = vmul.f32 1.442695, %v1349_v54  ;;  %v1384_v49 = vmul.f32 1.442695, %v1350_v20  ;;  %v1357_v19 = vsub.f32 %v4878_v39, %v1287_v58 }
 0x2fe   :  { %v1394_v54 = vmul.f32 1.442695, %v1355_v1  ;;  %v1352_v43 = vsub.f32 %v4881_v63, %v1279_v7  ;;  %v1386_v37 = vmul.f32 1.442695, %v1351_v33  ;;  %v1359_v41 = vsub.f32 %v4914_v47, %v1291_v8 }
 0x2ff   :  { %3933 = vpow2.f32 %v1380_v17  ;;  %v1295_v17 = vrot.slane %v1262_v52, %v5065_v46  ;;  %v1398_v62 = vmul.f32 1.442695, %v1357_v19  ;;  %v1353_v20 = vsub.f32 %v4874_v3, %v1279_v7 }
 0x300   :  { %3935 = vpow2.f32 %v1382_v28  ;;  %v1388_v28 = vmul.f32 1.442695, %v1352_v43  ;;  %v1299_v63 = vrot.slane %v1262_v52, %v5071_v0  ;;  %v1402_v2 = vmul.f32 1.442695, %v1359_v41 }
 0x301   :  { %3937 = vpow2.f32 %v1384_v49  ;;  %v1361_v1 = vsub.f32 %v4930_v5, %v1295_v17  ;;  %v1354_v47 = vsub.f32 %v4897_v57, %v1283_v26  ;;  %v1390_v3 = vmul.f32 1.442695, %v1353_v20 }
 0x302   :  { %3939 = vpow2.f32 %v1394_v54  ;;  %v1363_v43 = vsub.f32 %v4946_v59, %v1299_v63  ;;  %v1356_v5 = vsub.f32 %v4885_v45, %v1287_v58  ;;  %v1358_v59 = vsub.f32 %v4910_v10, %v1291_v8 }
 0x303   :  { %3941 = vpow2.f32 %v1386_v37  ;;  %v1406_v7 = vmul.f32 1.442695, %v1361_v1  ;;  %v1392_v33 = vmul.f32 1.442695, %v1354_v47 }
 0x304   :  { %3943 = vpow2.f32 %v1398_v62  ;;  %v1410_v57 = vmul.f32 1.442695, %v1363_v43  ;;  %v1396_v19 = vmul.f32 1.442695, %v1356_v5  ;;  %v1360_v62 = vsub.f32 %v4925_v51, %v1295_v17 }
 0x305   :  { %3945 = vpow2.f32 %v1388_v28  ;;  %v1400_v20 = vmul.f32 1.442695, %v1358_v59 }
 0x306   :  { %3947 = vpow2.f32 %v1402_v2  ;;  %v1362_v2 = vsub.f32 %v4943_v4, %v1299_v63  ;;  %v1404_v47 = vmul.f32 1.442695, %v1360_v62 }
 0x307   :  { %3949 = vpow2.f32 %v1390_v3 }
 0x308   :  { %3951 = vpow2.f32 %v1406_v7  ;;  %v1408_v5 = vmul.f32 1.442695, %v1362_v2 }
 0x309   :  { %v5076_v40 = vpop.eup %3933  ;;  %3953 = vpow2.f32 %v1392_v33 }
 0x30a   :  { %v5078_v39 = vpop.eup %3935  ;;  %1477 = vperm.xlu0 %3867, %v5076_v40   ;;  %3955 = vpow2.f32 %v1410_v57 }
 0x30b   :  { %1480 = vperm.xlu1 %3868, %v5078_v39   ;;  %v5085_v37 = vpop.eup %3937  ;;  %3957 = vpow2.f32 %v1396_v19 }
 0x30c   :  { %v5089_v52 = vpop.eup %3939  ;;  %3959 = vpow2.f32 %v1400_v20 }
 0x30d   :  { %v5093_v49 = vpop.eup %3941  ;;  %3961 = vpow2.f32 %v1404_v47 }
 0x30e   :  { %1498 = vperm.xlu0 %3867, %v5089_v52   ;;  %v5096_v26 = vpop.eup %3943 }
 0x30f   :  { %1483 = vperm.xlu1 %3868, %v5085_v37   ;;  %v5100_v54 = vpop.eup %3945 }
 0x310   :  { %v5104_v41 = vpop.eup %3947 }
 0x311   :  { %v5108_v10 = vpop.eup %3949 }
 0x312   :  { %1504 = vperm.xlu0 %3867, %v5096_v26   ;;  %v5113_v1 = vpop.eup %3951 }
 0x313   :  { %1486 = vperm.xlu1 %3868, %v5093_v49   ;;  %v5118_v17 = vpop.eup %3953 }
 0x316   :  { %1510 = vperm.xlu0 %3867, %v5104_v41  }
 0x317   :  { %1489 = vperm.xlu1 %3868, %v5100_v54  }
 0x318   :  { %v1265_v45 = vpop.xlane.xlu1 %1264 }
 0x319   :  { %v1307_v58 = vrot.slane %v1265_v45, %v5040_v38  ;;  %v1311_v8 = vrot.slane %v1265_v45, %v5054_v27  ;;  %v1303_v51 = vrot.slane %v1265_v45, %v4763_v12  ;;  %v1315_v3 = vrot.slane %v1265_v45, %v5043_v29 }
 0x31a   :  { %1516 = vperm.xlu0 %3867, %v5113_v1   ;;  %v1319_v33 = vrot.slane %v1265_v45, %v5050_v22 }
 0x31b   :  { %v1367_v28 = vsub.f32 %v4965_v48, %v1307_v58  ;;  %1492 = vperm.xlu1 %3868, %v5108_v10   ;;  %v1369_v43 = vsub.f32 %v4969_v9, %v1311_v8  ;;  %v5123_v48 = vpop.eup %3955  ;;  %v1364_v4 = vsub.f32 %v4955_v61, %v1303_v51  ;;  %v1371_v57 = vsub.f32 %v4973_v60, %v1315_v3 }
 0x31c   :  { %v5127_v63 = vpop.eup %3957  ;;  %v1365_v9 = vsub.f32 %v4959_v50, %v1303_v51  ;;  %v1323_v61 = vrot.slane %v1265_v45, %v5058_v55  ;;  %v1373_v20 = vsub.f32 %v4977_v18, %v1319_v33  ;;  %v1366_v60 = vsub.f32 %v4963_v35, %v1307_v58 }
 0x31d   :  { %v1418_v7 = vmul.f32 1.442695, %v1367_v28  ;;  %v1422_v59 = vmul.f32 1.442695, %v1369_v43  ;;  %v1412_v19 = vmul.f32 1.442695, %v1364_v4  ;;  %v5133_v62 = vpop.eup %3959  ;;  %v1327_v43 = vrot.slane %v1265_v45, %v5065_v46 }
 0x31e   :  { %1522 = vperm.xlu0 %3867, %v5123_v48   ;;  %v1426_v28 = vmul.f32 1.442695, %v1371_v57  ;;  %v1414_v2 = vmul.f32 1.442695, %v1365_v9  ;;  %v5139_v47 = vpop.eup %3961  ;;  %v1375_v50 = vsub.f32 %v4985_v56, %v1323_v61  ;;  %v1430_v51 = vmul.f32 1.442695, %v1373_v20 }
 0x31f   :  { %1495 = vperm.xlu1 %3868, %v5118_v17   ;;  %3963 = vpow2.f32 %v1418_v7  ;;  %v1368_v18 = vsub.f32 %v4967_v53, %v1311_v8  ;;  %v1331_v58 = vrot.slane %v1265_v45, %v5071_v0  ;;  %v1377_v4 = vsub.f32 %v5009_v31, %v1327_v43 }
 0x320   :  { %3965 = vpow2.f32 %v1408_v5  ;;  %v1416_v5 = vmul.f32 1.442695, %v1366_v60  ;;  %v1434_v56 = vmul.f32 1.442695, %v1375_v50 }
 0x321   :  { %3967 = vpow2.f32 %v1422_v59  ;;  %v1370_v59 = vsub.f32 %v4971_v11, %v1315_v3  ;;  %v1420_v53 = vmul.f32 1.442695, %v1368_v18  ;;  %v1379_v9 = vsub.f32 %v5026_v32, %v1331_v58 }
 0x322   :  { %3969 = vpow2.f32 %v1412_v19  ;;  %v1438_v45 = vmul.f32 1.442695, %v1377_v4  ;;  %v1372_v19 = vsub.f32 %v4975_v36, %v1319_v33  ;;  %v1374_v32 = vsub.f32 %v4981_v44, %v1323_v61 }
 0x323   :  { %1501 = vperm.xlu1 %3868, %v5127_v63   ;;  %3971 = vpow2.f32 %v1426_v28  ;;  %v1424_v20 = vmul.f32 1.442695, %v1370_v59  ;;  %v1442_v3 = vmul.f32 1.442695, %v1379_v9  ;;  %v1376_v33 = vsub.f32 %v5004_v14, %v1327_v43 }
 0x324   :  { %3973 = vpow2.f32 %v1414_v2  ;;  %v1428_v60 = vmul.f32 1.442695, %v1372_v19  ;;  %v1432_v50 = vmul.f32 1.442695, %v1374_v32  ;;  %v1378_v61 = vsub.f32 %v5023_v23, %v1331_v58 }
 0x325   :  { %3975 = vpow2.f32 %v1430_v51  ;;  %v1436_v18 = vmul.f32 1.442695, %v1376_v33 }
 0x326   :  { %3977 = vpow2.f32 %v1416_v5  ;;  %v1440_v43 = vmul.f32 1.442695, %v1378_v61 }
 0x327   :  { %1507 = vperm.xlu1 %3868, %v5133_v62   ;;  %3979 = vpow2.f32 %v1434_v56 }
 0x328   :  { %3981 = vpow2.f32 %v1420_v53 }
 0x329   :  { %v5144_v7 = vpop.eup %3963  ;;  %3983 = vpow2.f32 %v1438_v45 }
 0x32a   :  { %1534 = vperm.xlu0 %3867, %v5144_v7   ;;  %v5148_v35 = vpop.eup %3965  ;;  %3985 = vpow2.f32 %v1424_v20 }
 0x32b   :  { %1513 = vperm.xlu1 %3868, %v5139_v47   ;;  %v5153_v57 = vpop.eup %3967  ;;  %3987 = vpow2.f32 %v1442_v3 }
 0x32c   :  { %v5157_v8 = vpop.eup %3969  ;;  %3989 = vpow2.f32 %v1428_v60 }
 0x32d   :  { %v5161_v31 = vpop.eup %3971  ;;  %3991 = vpow2.f32 %v1432_v50 }
 0x32e   :  { %1540 = vperm.xlu0 %3867, %v5153_v57   ;;  %v5165_v11 = vpop.eup %3973  ;;  %3993 = vpow2.f32 %v1436_v18 }
 0x32f   :  { %1519 = vperm.xlu1 %3868, %v5148_v35   ;;  %v5168_v28 = vpop.eup %3975  ;;  %3995 = vpow2.f32 %v1440_v43 }
 0x330   :  { %v5172_v2 = vpop.eup %3977 }
 0x331   :  { %v5175_v36 = vpop.eup %3979 }
 0x332   :  { %1546 = vperm.xlu0 %3867, %v5161_v31   ;;  %v5179_v51 = vpop.eup %3981 }
 0x333   :  { %1525 = vperm.xlu1 %3868, %v5157_v8   ;;  %v5182_v44 = vpop.eup %3983 }
 0x334   :  { %v5186_v5 = vpop.eup %3985 }
 0x335   :  { %v5189_v14 = vpop.eup %3987 }
 0x336   :  { %1552 = vperm.xlu0 %3867, %v5168_v28   ;;  %5659 = vst [vmem:[#allocation46_spill] sm:$0xff] %v5189_v14  ;;  %v5192_v4 = vpop.eup %3989 }
 0x337   :  { %1528 = vperm.xlu1 %3868, %v5165_v11   ;;  %v5195_v23 = vpop.eup %3991 }
 0x338   :  { %v5198_v58 = vpop.eup %3993 }
 0x339   :  { %5660 = vst [vmem:[#allocation47_spill] sm:$0xff] %v5198_v58  ;;  %v5201_v56 = vpop.eup %3995 }
 0x33a   :  { %1558 = vperm.xlu0 %3867, %v5175_v36   ;;  %5661 = vst [vmem:[#allocation48_spill] sm:$0xff] %v5201_v56 }
 0x33b   :  { %1531 = vperm.xlu1 %3868, %v5172_v2  }
 0x33e   :  { %1564 = vperm.xlu0 %3867, %v5182_v44  }
 0x33f   :  { %1537 = vperm.xlu1 %3868, %v5179_v51  }
 0x342   :  { %1570 = vperm.xlu0 %3867, %v5189_v14  }
 0x343   :  { %1543 = vperm.xlu1 %3868, %v5186_v5  }
 0x347   :  { %1549 = vperm.xlu1 %3868, %v5192_v4  }
 0x34b   :  { %1555 = vperm.xlu1 %3868, %v5195_v23  }
 0x34f   :  { %1561 = vperm.xlu1 %3868, %v5198_v58  }
 0x353   :  { %1567 = vperm.xlu1 %3868, %v5201_v56  }
 0x389   :  { %v1478_v53 = vpop.permute.xlu0 %1477 }
 0x38a   :  { %v1481_v59 = vpop.permute.xlu1 %1480  ;;  %v1575_v25 = vrot.slane %v1478_v53, %v4890_v42 }
 0x38b   :  { %v1579_v30 = vrot.slane %v1481_v59, %v4893_v6 }
 0x38d   :  { %v1499_v45 = vpop.permute.xlu0 %1498 }
 0x38e   :  { %v1484_v9 = vpop.permute.xlu1 %1483  ;;  %v1606_v56 = vrot.slane %v1499_v45, %v4893_v6 }
 0x38f   :  { %v1584_v21 = vrot.slane %v1484_v9, %v4890_v42  ;;  %v1580_v9 = vsel %vm1099_vm1, %v1579_v30, %v1575_v25 }
 0x391   :  { %v1505_v20 = vpop.permute.xlu0 %1504 }
 0x392   :  { %v1487_v19 = vpop.permute.xlu1 %1486  ;;  %v1615_v14 = vrot.slane %v1505_v20, %v4893_v6 }
 0x393   :  { %v1588_v18 = vrot.slane %v1487_v19, %v4893_v6 }
 0x395   :  { %v1511_v60 = vpop.permute.xlu0 %1510  ;;  %v1589_v19 = vsel %vm1099_vm1, %v1588_v18, %v1584_v21 }
 0x396   :  { %v1490_v3 = vpop.permute.xlu1 %1489 }
 0x397   :  { %v1593_v13 = vrot.slane %v1490_v3, %v4890_v42 }
 0x399   :  { %v1517_v50 = vpop.permute.xlu0 %1516 }
 0x39a   :  { %v1493_v32 = vpop.permute.xlu1 %1492  ;;  %v1633_v45 = vrot.slane %v1517_v50, %v4893_v6 }
 0x39b   :  { %v1597_v43 = vrot.slane %v1493_v32, %v4893_v6 }
 0x39d   :  { %v1523_v16 = vpop.permute.xlu0 %1522  ;;  %v1598_v59 = vsel %vm1099_vm1, %v1597_v43, %v1593_v13 }
 0x39e   :  { %v1496_v33 = vpop.permute.xlu1 %1495 }
 0x39f   :  { %v1602_v15 = vrot.slane %v1496_v33, %v4890_v42  ;;  %v1624_v33 = vrot.slane %v1511_v60, %v4893_v6 }
 0x3a1   :  { %v1607_v3 = vsel %vm1099_vm1, %v1606_v56, %v1602_v15  ;;  %v1642_v15 = vrot.slane %v1523_v16, %v4893_v6 }
 0x3a2   :  { %v1502_v61 = vpop.permute.xlu1 %1501 }
 0x3a3   :  { %v1611_v24 = vrot.slane %v1502_v61, %v4890_v42  ;;  %v1716_v61 = vsel %vm1236_vm2, %v1589_v19, %v1580_v9 }
 0x3a4   :  { %v1717_v20 = vsel %vm1238_vm3, %v1598_v59, %v1716_v61 }
 0x3a5   :  { %v1616_v21 = vsel %vm1099_vm1, %v1615_v14, %v1611_v24  ;;  %v1718_v18 = vsel %vm1240_vm4, %v1607_v3, %v1717_v20 }
 0x3a6   :  { %v1508_v34 = vpop.permute.xlu1 %1507  ;;  %v1719_v56 = vsel %vm1242_vm5, %v1616_v21, %v1718_v18 }
 0x3a7   :  { %v1620_v32 = vrot.slane %v1508_v34, %v4890_v42 }
 0x3a9   :  { %v1535_v34 = vpop.permute.xlu0 %1534  ;;  %v1625_v13 = vsel %vm1099_vm1, %v1624_v33, %v1620_v32 }
 0x3aa   :  { %v1514_v53 = vpop.permute.xlu1 %1513  ;;  %v1720_v50 = vsel %vm1244_vm6, %v1625_v13, %v1719_v56 }
 0x3ab   :  { %v1629_v58 = vrot.slane %v1514_v53, %v4890_v42 }
 0x3ad   :  { %v1634_v25 = vsel %vm1099_vm1, %v1633_v45, %v1629_v58  ;;  %v1541_v43 = vpop.permute.xlu0 %1540 }
 0x3ae   :  { %v1520_v30 = vpop.permute.xlu1 %1519  ;;  %v1721_v14 = vsel %vm1246_vm7, %v1634_v25, %v1720_v50  ;;  %v1660_v25 = vrot.slane %v1535_v34, %v4893_v6  ;;  %v1669_v56 = vrot.slane %v1541_v43, %v4893_v6 }
 0x3af   :  { %v1638_v60 = vrot.slane %v1520_v30, %v4890_v42 }
 0x3b1   :  { %v1643_v24 = vsel %vm1099_vm1, %v1642_v15, %v1638_v60  ;;  %v1547_v53 = vpop.permute.xlu0 %1546 }
 0x3b2   :  { %v1526_v19 = vpop.permute.xlu1 %1525  ;;  %v1722_v32 = vsel %vm1248_vm8, %v1643_v24, %v1721_v14  ;;  %v1678_v24 = vrot.slane %v1547_v53, %v4893_v6 }
 0x3b3   :  { %v1732_v59 = vsel %vm1259_vm9, %v1722_v32, 0.0  ;;  %v1647_v50 = vrot.slane %v1526_v19, %v4890_v42 }
 0x3b4   :  { %1733 = vadd.xlane.f32.xlu1 %v1732_v59 }
 0x3b5   :  { %v1553_v9 = vpop.permute.xlu0 %1552 }
 0x3b6   :  { %v1529_v58 = vpop.permute.xlu1 %1528  ;;  %v1687_v59 = vrot.slane %v1553_v9, %v4893_v6 }
 0x3b7   :  { %v1651_v30 = vrot.slane %v1529_v58, %v4893_v6 }
 0x3b9   :  { %v1559_v61 = vpop.permute.xlu0 %1558  ;;  %v1652_v58 = vsel %vm1099_vm1, %v1651_v30, %v1647_v50 }
 0x3ba   :  { %v1532_v16 = vpop.permute.xlu1 %1531 }
 0x3bb   :  { %v1656_v21 = vrot.slane %v1532_v16, %v4890_v42 }
 0x3bd   :  { %v1565_v13 = vpop.permute.xlu0 %1564  ;;  %v1661_v14 = vsel %vm1099_vm1, %v1660_v25, %v1656_v21 }
 0x3be   :  { %v1538_v33 = vpop.permute.xlu1 %1537  ;;  %v1723_v19 = vsel %vm1236_vm2, %v1661_v14, %v1652_v58  ;;  %v1705_v53 = vrot.slane %v1565_v13, %v4893_v6 }
 0x3bf   :  { %v1665_v20 = vrot.slane %v1538_v33, %v4890_v42  ;;  %v1696_v33 = vrot.slane %v1559_v61, %v4893_v6 }
 0x3c1   :  { %v1670_v34 = vsel %vm1099_vm1, %v1669_v56, %v1665_v20 }
 0x3c2   :  { %v1544_v3 = vpop.permute.xlu1 %1543  ;;  %v1724_v9 = vsel %vm1238_vm3, %v1670_v34, %v1723_v19 }
 0x3c3   :  { %v1674_v15 = vrot.slane %v1544_v3, %v4890_v42 }
 0x3c5   :  { %v1679_v43 = vsel %vm1099_vm1, %v1678_v24, %v1674_v15 }
 0x3c6   :  { %v1550_v45 = vpop.permute.xlu1 %1549 }
 0x3c7   :  { %v1683_v60 = vrot.slane %v1550_v45, %v4890_v42  ;;  %v1571_v45 = vpop.permute.xlu0 %1570 }
 0x3c8   :  { %v1714_v30 = vrot.slane %v1571_v45, %v4893_v6 }
 0x3c9   :  { %v1688_v21 = vsel %vm1099_vm1, %v1687_v59, %v1683_v60 }
 0x3ca   :  { %v1556_v18 = vpop.permute.xlu1 %1555 }
 0x3cb   :  { %v1692_v32 = vrot.slane %v1556_v18, %v4890_v42  ;;  %v1725_v18 = vsel %vm1240_vm4, %v1679_v43, %v1724_v9 }
 0x3cc   :  { %v1726_v15 = vsel %vm1242_vm5, %v1688_v21, %v1725_v18 }
 0x3cd   :  { %v1697_v20 = vsel %vm1099_vm1, %v1696_v33, %v1692_v32 }
 0x3ce   :  { %v1562_v16 = vpop.permute.xlu1 %1561  ;;  %v1727_v13 = vsel %vm1244_vm6, %v1697_v20, %v1726_v15 }
 0x3cf   :  { %v1701_v3 = vrot.slane %v1562_v16, %v4890_v42 }
 0x3d1   :  { %v1706_v25 = vsel %vm1099_vm1, %v1705_v53, %v1701_v3 }
 0x3d2   :  { %v1568_v61 = vpop.permute.xlu1 %1567  ;;  %v1728_v60 = vsel %vm1246_vm7, %v1706_v25, %v1727_v13 }
 0x3d3   :  { %v1710_v56 = vrot.slane %v1568_v61, %v4890_v42 }
 0x3d5   :  { %v1715_v50 = vsel %vm1099_vm1, %v1714_v30, %v1710_v56  ;;  %v5664_v56 = vld [vmem:[#allocation48_spill] sm:$0xff] }
 0x3d6   :  { %v1729_v24 = vsel %vm1248_vm8, %v1715_v50, %v1728_v60  ;;  %v3029_v50 = vld [vmem:[#allocation17] sm:$0xff]  ;;  %v3030_v60 = vld [vmem:[#allocation17 + $0x8] sm:$0xff] }
 0x3d7   :  { %v1735_v14 = vsel %vm1259_vm9, %v1729_v24, 0.0  ;;  %v2193_v24 = vld [vmem:[#allocation11 + $0x10] sm:$0xff] }
 0x3d8   :  { %1736 = vadd.xlane.f32.xlu0 %v1735_v14  ;;  %v2194_v14 = vld [vmem:[#allocation11 + $0x18] sm:$0xff] }
 0x441   :  { %v1734_v32 = vpop.xlane.xlu1 %1733 }
 0x442   :  { %3997 = vrcp.f32 %v1734_v32  ;;  %v3761_v32 = vpack.c.bf16 %v2194_v14, %v2193_v24 }
 0x44c   :  { %v3998_v59 = vpop.eup %3997 }
 0x44d   :  { %v1745_v6 = vrot.slane %v3998_v59, %v4763_v12  ;;  %v1749_v16 = vrot.slane %v3998_v59, %v5040_v38  ;;  %v1753_v43 = vrot.slane %v3998_v59, %v5054_v27 }
 0x44f   :  { %v1823_v34 = vmul.f32 %v5078_v39, %v1745_v6  ;;  %v1822_v42 = vmul.f32 %v5076_v40, %v1745_v6  ;;  %v1824_v58 = vmul.f32 %v5085_v37, %v1749_v16  ;;  %v1825_v33 = vmul.f32 %v5093_v49, %v1749_v16  ;;  %v3032_v6 = vld [vmem:[#allocation17 + $0x18] sm:$0xff] }
 0x450   :  { %v1826_v3 = vmul.f32 %v5100_v54, %v1753_v43  ;;  %v1827_v19 = vmul.f32 %v5108_v10, %v1753_v43  ;;  %v1757_v39 = vrot.slane %v3998_v59, %v5043_v29  ;;  %v1761_v37 = vrot.slane %v3998_v59, %v5050_v22  ;;  %v5665_v43 = vld [vmem:[#allocation34_spill] sm:$0xff] }
 0x451   :  { %1861 = vperm.xlu1 %3868, %v1823_v34   ;;  %1856 = vperm.xlu0 %3867, %v1822_v42   ;;  %v1765_v54 = vrot.slane %v3998_v59, %v5058_v55  ;;  %v5316_v34 = vld [vmem:[#allocation10] sm:$0xff] }
 0x452   :  { %v1828_v40 = vmul.f32 %v5118_v17, %v1757_v39  ;;  %v1829_v53 = vmul.f32 %v5089_v52, %v1757_v39  ;;  %v1830_v49 = vmul.f32 %v5127_v63, %v1761_v37  ;;  %v1831_v45 = vmul.f32 %v5096_v26, %v1761_v37 }
 0x453   :  { %v1832_v10 = vmul.f32 %v5133_v62, %v1765_v54  ;;  %v1833_v21 = vmul.f32 %v5104_v41, %v1765_v54  ;;  %v1769_v17 = vrot.slane %v3998_v59, %v5065_v46  ;;  %v1773_v26 = vrot.slane %v3998_v59, %v5071_v0  ;;  %v3031_v59 = vld [vmem:[#allocation17 + $0x10] sm:$0xff] }
 0x454   :  { %v5667_v39 = vunpack.c.h.bf16 %v5665_v43 }
 0x455   :  { %1866 = vperm.xlu1 %3868, %v1824_v58   ;;  %1871 = vperm.xlu0 %3867, %v1825_v33   ;;  %v1834_v9 = vmul.f32 %v5139_v47, %v1769_v17  ;;  %v1835_v63 = vmul.f32 %v5113_v1, %v1769_v17  ;;  %v1836_v20 = vmul.f32 %v5148_v35, %v1773_v26 }
 0x456   :  { %v1837_v62 = vmul.f32 %v5123_v48, %v1773_v26 }
 0x459   :  { %1876 = vperm.xlu1 %3868, %v1826_v3   ;;  %1881 = vperm.xlu0 %3867, %v1827_v19   ;;  %v5666_v3 = vunpack.c.l.bf16 %v5665_v43 }
 0x45d   :  { %1886 = vperm.xlu1 %3868, %v1828_v40   ;;  %1891 = vperm.xlu0 %3867, %v1829_v53   ;;  %v5668_v53 = vld [vmem:[#allocation32_spill] sm:$0xff] }
 0x45e   :  { %v5669_v37 = vunpack.c.h.bf16 %v5668_v53 }
 0x461   :  { %1896 = vperm.xlu1 %3868, %v1830_v49   ;;  %1901 = vperm.xlu0 %3867, %v1831_v45   ;;  %v5670_v45 = vunpack.c.l.bf16 %v5668_v53 }
 0x465   :  { %1906 = vperm.xlu1 %3868, %v1832_v10   ;;  %1911 = vperm.xlu0 %3867, %v1833_v21   ;;  %v1737_v52 = vpop.xlane.xlu0 %1736 }
 0x466   :  { %3999 = vrcp.f32 %v1737_v52 }
 0x469   :  { %1916 = vperm.xlu1 %3868, %v1834_v9   ;;  %1921 = vperm.xlu0 %3867, %v1835_v63   ;;  %v5671_v9 = vld [vmem:[#allocation30_spill] sm:$0xff] }
 0x46a   :  { %v5672_v63 = vunpack.c.l.bf16 %v5671_v9 }
 0x46d   :  { %1926 = vperm.xlu1 %3868, %v1836_v20   ;;  %1931 = vperm.xlu0 %3867, %v1837_v62   ;;  %v5673_v20 = vunpack.c.h.bf16 %v5671_v9 }
 0x470   :  { %v4000_v41 = vpop.eup %3999 }
 0x471   :  { %v1777_v18 = vrot.slane %v4000_v41, %v4763_v12  ;;  %v1781_v47 = vrot.slane %v4000_v41, %v5040_v38  ;;  %v1785_v35 = vrot.slane %v4000_v41, %v5054_v27 }
 0x473   :  { %v1839_v25 = vmul.f32 %v5165_v11, %v1777_v18  ;;  %v1838_v61 = vmul.f32 %v5157_v8, %v1777_v18  ;;  %v1841_v1 = vmul.f32 %v5144_v7, %v1781_v47  ;;  %v1840_v30 = vmul.f32 %v5172_v2, %v1781_v47 }
 0x474   :  { %v1843_v48 = vmul.f32 %v5153_v57, %v1785_v35  ;;  %v1842_v12 = vmul.f32 %v5179_v51, %v1785_v35  ;;  %v1789_v11 = vrot.slane %v4000_v41, %v5043_v29  ;;  %v1793_v7 = vrot.slane %v4000_v41, %v5050_v22 }
 0x475   :  { %1941 = vperm.xlu0 %3867, %v1839_v25   ;;  %1936 = vperm.xlu1 %3868, %v1838_v61   ;;  %v1797_v57 = vrot.slane %v4000_v41, %v5058_v55 }
 0x476   :  { %v1845_v38 = vmul.f32 %v5161_v31, %v1789_v11  ;;  %v1844_v8 = vmul.f32 %v5186_v5, %v1789_v11  ;;  %v1847_v27 = vmul.f32 %v5168_v28, %v1793_v7  ;;  %v1846_v2 = vmul.f32 %v5192_v4, %v1793_v7  ;;  %v5662_v5 = vld [vmem:[#allocation47_spill] sm:$0xff]  ;;  %v5663_v4 = vld [vmem:[#allocation46_spill] sm:$0xff] }
 0x477   :  { %v1849_v29 = vmul.f32 %v5175_v36, %v1797_v57  ;;  %v1848_v51 = vmul.f32 %v5195_v23, %v1797_v57  ;;  %v1801_v31 = vrot.slane %v4000_v41, %v5065_v46  ;;  %v1805_v28 = vrot.slane %v4000_v41, %v5071_v0  ;;  %v2191_v36 = vld [vmem:[#allocation11] sm:$0xff]  ;;  %v2192_v23 = vld [vmem:[#allocation11 + $0x8] sm:$0xff] }
 0x478   :  { %v3757_v46 = vpack.c.bf16 %v2192_v23, %v2191_v36  ;;  %v3809_v0 = vpack.c.bf16 %v3032_v6, %v3031_v59  ;;  %v5680_v59 = vld [vmem:[#allocation35_spill] sm:$0xff] }
 0x479   :  { %1951 = vperm.xlu0 %3867, %v1841_v1   ;;  %1946 = vperm.xlu1 %3868, %v1840_v30   ;;  %v1851_v22 = vmul.f32 %v5182_v44, %v1801_v31  ;;  %v1850_v15 = vmul.f32 %v5662_v5, %v1801_v31  ;;  %v1853_v55 = vmul.f32 %v5663_v4, %v1805_v28  ;;  %v5681_v6 = vunpack.c.l.bf16 %v5680_v59 }
 0x47a   :  { %v1852_v13 = vmul.f32 %v5664_v56, %v1805_v28  ;;  %v3805_v44 = vpack.c.bf16 %v3030_v60, %v3029_v50  ;;  %3758 = vmatprep.subr.bf16.mxu0 %v3757_v46 }
 0x47b   :  { %3760 = vmatpush3.bf16.msra.mxu0 %v3757_v46 }
 0x47c   :  { %3806 = vmatprep.subr.bf16.mxu1 %v3805_v44  ;;  %3762 = vmatprep.subr.bf16.mxu0 %v3761_v32 }
 0x47d   :  { %1961 = vperm.xlu0 %3867, %v1843_v48   ;;  %1956 = vperm.xlu1 %3868, %v1842_v12   ;;  %v5674_v12 = vld [vmem:[#allocation31_spill] sm:$0xff] }
 0x47e   :  { %3808 = vmatpush3.bf16.msra.mxu1 %v3805_v44  ;;  %v5675_v11 = vunpack.c.l.bf16 %v5674_v12 }
 0x47f   :  { %3810 = vmatprep.subr.bf16.mxu1 %v3809_v0  ;;  %3764 = vmatpush3.bf16.msra.mxu0 %v3761_v32 }
 0x480   :  { %3644 = vmatprep.subr.mxu0 %v5316_v34 }
 0x481   :  { %1971 = vperm.xlu0 %3867, %v1845_v38   ;;  %1966 = vperm.xlu1 %3868, %v1844_v8   ;;  %v5676_v8 = vunpack.c.h.bf16 %v5674_v12 }
 0x482   :  { %3812 = vmatpush3.bf16.msra.mxu1 %v3809_v0 }
 0x485   :  { %1981 = vperm.xlu0 %3867, %v1847_v27   ;;  %1976 = vperm.xlu1 %3868, %v1846_v2  }
 0x489   :  { %1991 = vperm.xlu0 %3867, %v1849_v29   ;;  %1986 = vperm.xlu1 %3868, %v1848_v51  }
 0x48d   :  { %2001 = vperm.xlu0 %3867, %v1851_v22   ;;  %1996 = vperm.xlu1 %3868, %v1850_v15   ;;  %v5677_v15 = vld [vmem:[#allocation33_spill] sm:$0xff] }
 0x48e   :  { %v5678_v28 = vunpack.c.l.bf16 %v5677_v15 }
 0x491   :  { %2011 = vperm.xlu0 %3867, %v1853_v55   ;;  %2006 = vperm.xlu1 %3868, %v1852_v13   ;;  %v5679_v55 = vunpack.c.h.bf16 %v5677_v15 }
 0x4d0   :  { %v1862_v42 = vpop.permute.xlu1 %1861  ;;  %v1857_v16 = vpop.permute.xlu0 %1856 }
 0x4d1   :  { %v2015_v49 = vmul.f32 %v5669_v37, %v1862_v42  ;;  %v2014_v54 = vmul.f32 %v5670_v45, %v1857_v16  ;;  %v5682_v42 = vunpack.c.h.bf16 %v5680_v59 }
 0x4d3   :  { %v2047_v41 = vsel %vm270_vm0, %v2015_v49, 0.0  ;;  %v2046_v18 = vsel %vm270_vm0, %v2014_v54, 0.0  ;;  %v5683_v54 = vld [vmem:[#allocation36_spill] sm:$0xff] }
 0x4d4   :  { %v1867_v58 = vpop.permute.xlu1 %1866  ;;  %v1872_v33 = vpop.permute.xlu0 %1871  ;;  %v2048_v48 = vadd.f32 %v2047_v41, %v2046_v18 }
 0x4d5   :  { %v2016_v19 = vmul.f32 %v5666_v3, %v1867_v58  ;;  %v2017_v40 = vmul.f32 %v5667_v39, %v1872_v33 }
 0x4d6   :  { %v2049_v5 = vrot.slane %v2048_v48, 4 }
 0x4d7   :  { %v2055_v10 = vsel %vm270_vm0, %v2016_v19, 0.0  ;;  %v2056_v21 = vsel %vm270_vm0, %v2017_v40, 0.0 }
 0x4d8   :  { %v1877_v17 = vpop.permute.xlu1 %1876  ;;  %v1882_v52 = vpop.permute.xlu0 %1881  ;;  %v2057_v25 = vadd.f32 %v2056_v21, %v2055_v10  ;;  %v2050_v44 = vadd.f32 %v2049_v5, %v2048_v48  ;;  %v5684_v10 = vunpack.c.l.bf16 %v5683_v54 }
 0x4d9   :  { %v2018_v26 = vmul.f32 %v5672_v63, %v1877_v17  ;;  %v2019_v62 = vmul.f32 %v5673_v20, %v1882_v52  ;;  %v5685_v17 = vunpack.c.h.bf16 %v5683_v54 }
 0x4da   :  { %v2058_v27 = vrot.slane %v2057_v25, 4  ;;  %v2051_v49 = vrot.slane %v2050_v44, 2 }
 0x4db   :  { %v2064_v61 = vsel %vm270_vm0, %v2018_v26, 0.0  ;;  %v2065_v47 = vsel %vm270_vm0, %v2019_v62, 0.0 }
 0x4dc   :  { %v2066_v1 = vadd.f32 %v2065_v47, %v2064_v61  ;;  %v1887_v30 = vpop.permute.xlu1 %1886  ;;  %v1892_v35 = vpop.permute.xlu0 %1891  ;;  %v2059_v36 = vadd.f32 %v2058_v27, %v2057_v25 }
 0x4dd   :  { %v2020_v38 = vmul.f32 %v5675_v11, %v1887_v30  ;;  %v2021_v7 = vmul.f32 %v5676_v8, %v1892_v35  ;;  %v5686_v35 = vld [vmem:[#allocation37_spill] sm:$0xff] }
 0x4de   :  { %v2067_v29 = vrot.slane %v2066_v1, 4  ;;  %v2060_v33 = vrot.slane %v2059_v36, 2  ;;  %v5687_v48 = vunpack.c.l.bf16 %v5686_v35  ;;  %v5688_v11 = vunpack.c.h.bf16 %v5686_v35 }
 0x4df   :  { %v2073_v2 = vsel %vm270_vm0, %v2020_v38, 0.0  ;;  %v2074_v57 = vsel %vm270_vm0, %v2021_v7, 0.0 }
 0x4e0   :  { %v2075_v51 = vadd.f32 %v2074_v57, %v2073_v2  ;;  %v1897_v31 = vpop.permute.xlu1 %1896  ;;  %v1902_v22 = vpop.permute.xlu0 %1901  ;;  %v2068_v46 = vadd.f32 %v2067_v29, %v2066_v1  ;;  %v2061_v26 = vadd.f32 %v2060_v33, %v2059_v36  ;;  %v2052_v1 = vadd.f32 %v2051_v49, %v2050_v44 }
 0x4e1   :  { %v2022_v4 = vmul.f32 %v5678_v28, %v1897_v31  ;;  %v2023_v56 = vmul.f32 %v5679_v55, %v1902_v22 }
 0x4e2   :  { %v2076_v13 = vrot.slane %v2075_v51, 4  ;;  %v2069_v19 = vrot.slane %v2068_v46, 2  ;;  %v2062_v2 = vrot.slane %v2061_v26, 1  ;;  %v2053_v15 = vrot.slane %v2052_v1, 1 }
 0x4e3   :  { %v2082_v23 = vsel %vm270_vm0, %v2022_v4, 0.0  ;;  %v2083_v50 = vsel %vm270_vm0, %v2023_v56, 0.0 }
 0x4e4   :  { %v2084_v60 = vadd.f32 %v2083_v50, %v2082_v23  ;;  %v1907_v24 = vpop.permute.xlu1 %1906  ;;  %v1912_v14 = vpop.permute.xlu0 %1911  ;;  %v2077_v32 = vadd.f32 %v2076_v13, %v2075_v51  ;;  %v2070_v41 = vadd.f32 %v2069_v19, %v2068_v46  ;;  %v2063_v13 = vadd.f32 %v2062_v2, %v2061_v26  ;;  %v5689_v19 = vld [vmem:[#allocation39_spill] sm:$0xff] }
 0x4e5   :  { %v2024_v0 = vmul.f32 %v5681_v6, %v1907_v24  ;;  %v2025_v16 = vmul.f32 %v5682_v42, %v1912_v14  ;;  %v2054_v14 = vadd.f32 %v2053_v15, %v2052_v1 }
 0x4e6   :  { %v2085_v58 = vrot.slane %v2084_v60, 4  ;;  %v2078_v45 = vrot.slane %v2077_v32, 2  ;;  %v2071_v51 = vrot.slane %v2070_v41, 1 }
 0x4e7   :  { %v2091_v43 = vsel %vm270_vm0, %v2024_v0, 0.0  ;;  %v2092_v3 = vsel %vm270_vm0, %v2025_v16, 0.0  ;;  %v2211_v0 = vsel %vm1236_vm2, %v2063_v13, %v2054_v14 }
 0x4e8   :  { %v2086_v39 = vadd.f32 %v2085_v58, %v2084_v60  ;;  %v2093_v40 = vadd.f32 %v2092_v3, %v2091_v43  ;;  %v1917_v53 = vpop.permute.xlu1 %1916  ;;  %v1922_v37 = vpop.permute.xlu0 %1921  ;;  %v2079_v30 = vadd.f32 %v2078_v45, %v2077_v32  ;;  %v2072_v23 = vadd.f32 %v2071_v51, %v2070_v41 }
 0x4e9   :  { %v2026_v21 = vmul.f32 %v5684_v10, %v1917_v53  ;;  %v2027_v52 = vmul.f32 %v5685_v17, %v1922_v37  ;;  %v5691_v53 = vunpack.c.h.bf16 %v5689_v19  ;;  %v5692_v10 = vld [vmem:[#allocation38_spill] sm:$0xff] }
 0x4ea   :  { %v2087_v9 = vrot.slane %v2086_v39, 2  ;;  %v2094_v63 = vrot.slane %v2093_v40, 4  ;;  %v2080_v28 = vrot.slane %v2079_v30, 1  ;;  %v2212_v16 = vsel %vm1238_vm3, %v2072_v23, %v2211_v0 }
 0x4eb   :  { %v2100_v20 = vsel %vm270_vm0, %v2026_v21, 0.0  ;;  %v2101_v62 = vsel %vm270_vm0, %v2027_v52, 0.0  ;;  %v5693_v21 = vunpack.c.l.bf16 %v5692_v10  ;;  %v5694_v52 = vunpack.c.h.bf16 %v5692_v10 }
 0x4ec   :  { %v2095_v18 = vadd.f32 %v2094_v63, %v2093_v40  ;;  %v2102_v25 = vadd.f32 %v2101_v62, %v2100_v20  ;;  %v1927_v61 = vpop.permute.xlu1 %1926  ;;  %v1932_v47 = vpop.permute.xlu0 %1931  ;;  %v2088_v8 = vadd.f32 %v2087_v9, %v2086_v39  ;;  %v2081_v44 = vadd.f32 %v2080_v28, %v2079_v30 }
 0x4ed   :  { %v2028_v12 = vmul.f32 %v5687_v48, %v1927_v61  ;;  %v2029_v38 = vmul.f32 %v5688_v11, %v1932_v47  ;;  %v5690_v39 = vunpack.c.l.bf16 %v5689_v19  ;;  %v5695_v61 = vld [vmem:[#allocation40_spill] sm:$0xff] }
 0x4ee   :  { %v2096_v7 = vrot.slane %v2095_v18, 2  ;;  %v2103_v27 = vrot.slane %v2102_v25, 4  ;;  %v2089_v4 = vrot.slane %v2088_v8, 1  ;;  %v2213_v49 = vsel %vm1240_vm4, %v2081_v44, %v2212_v16 }
 0x4ef   :  { %v2109_v57 = vsel %vm270_vm0, %v2028_v12, 0.0  ;;  %v2110_v29 = vsel %vm270_vm0, %v2029_v38, 0.0  ;;  %v5696_v47 = vunpack.c.l.bf16 %v5695_v61  ;;  %v5697_v30 = vunpack.c.h.bf16 %v5695_v61 }
 0x4f0   :  { %v2097_v31 = vadd.f32 %v2096_v7, %v2095_v18  ;;  %v2104_v22 = vadd.f32 %v2103_v27, %v2102_v25  ;;  %v2111_v5 = vadd.f32 %v2110_v29, %v2109_v57  ;;  %v2090_v32 = vadd.f32 %v2089_v4, %v2088_v8  ;;  %v5698_v29 = vld [vmem:[#allocation41_spill] sm:$0xff] }
 0x4f1   :  { %v5699_v51 = vunpack.c.l.bf16 %v5698_v29 }
 0x4f2   :  { %v2105_v55 = vrot.slane %v2104_v22, 2  ;;  %v2112_v56 = vrot.slane %v2111_v5, 4  ;;  %v2098_v36 = vrot.slane %v2097_v31, 1  ;;  %v2214_v54 = vsel %vm1242_vm5, %v2090_v32, %v2213_v49 }
 0x4f4   :  { %v2106_v50 = vadd.f32 %v2105_v55, %v2104_v22  ;;  %v2113_v46 = vadd.f32 %v2112_v56, %v2111_v5  ;;  %v1937_v60 = vpop.permute.xlu1 %1936  ;;  %v1942_v24 = vpop.permute.xlu0 %1941  ;;  %v2099_v42 = vadd.f32 %v2098_v36, %v2097_v31  ;;  %v5700_v22 = vunpack.c.h.bf16 %v5698_v29 }
 0x4f5   :  { %v2030_v17 = vmul.f32 %v5693_v21, %v1937_v60  ;;  %v2031_v9 = vmul.f32 %v5694_v52, %v1942_v24 }
 0x4f6   :  { %v2107_v59 = vrot.slane %v2106_v50, 1  ;;  %v2114_v6 = vrot.slane %v2113_v46, 2  ;;  %v2215_v63 = vsel %vm1244_vm6, %v2099_v42, %v2214_v54 }
 0x4f7   :  { %v2118_v12 = vsel %vm270_vm0, %v2030_v17, 0.0  ;;  %v2119_v11 = vsel %vm270_vm0, %v2031_v9, 0.0 }
 0x4f8   :  { %v2108_v58 = vadd.f32 %v2107_v59, %v2106_v50  ;;  %v2115_v33 = vadd.f32 %v2114_v6, %v2113_v46  ;;  %v1947_v43 = vpop.permute.xlu1 %1946  ;;  %v1952_v3 = vpop.permute.xlu0 %1951  ;;  %v2120_v15 = vadd.f32 %v2119_v11, %v2118_v12  ;;  %v5701_v50 = vld [vmem:[#allocation42_spill] sm:$0xff] }
 0x4f9   :  { %v2032_v40 = vmul.f32 %v5690_v39, %v1947_v43  ;;  %v2033_v37 = vmul.f32 %v5691_v53, %v1952_v3  ;;  %v5702_v46 = vunpack.c.l.bf16 %v5701_v50  ;;  %v5703_v24 = vunpack.c.h.bf16 %v5701_v50  ;;  %v5704_v43 = vld [vmem:[#allocation43_spill] sm:$0xff] }
 0x4fa   :  { %v2116_v45 = vrot.slane %v2115_v33, 1  ;;  %v2216_v41 = vsel %vm1246_vm7, %v2108_v58, %v2215_v63  ;;  %v2121_v44 = vrot.slane %v2120_v15, 4  ;;  %v5705_v3 = vunpack.c.l.bf16 %v5704_v43 }
 0x4fb   :  { %v2127_v18 = vsel %vm270_vm0, %v2032_v40, 0.0  ;;  %v2128_v25 = vsel %vm270_vm0, %v2033_v37, 0.0  ;;  %v5706_v39 = vunpack.c.h.bf16 %v5704_v43 }
 0x4fc   :  { %v1957_v26 = vpop.permute.xlu1 %1956  ;;  %v1962_v20 = vpop.permute.xlu0 %1961  ;;  %v2117_v62 = vadd.f32 %v2116_v45, %v2115_v33  ;;  %v2129_v7 = vadd.f32 %v2128_v25, %v2127_v18  ;;  %v2122_v53 = vadd.f32 %v2121_v44, %v2120_v15 }
 0x4fd   :  { %v2034_v1 = vmul.f32 %v5696_v47, %v1957_v26  ;;  %v2035_v35 = vmul.f32 %v5697_v30, %v1962_v20  ;;  %v5707_v26 = vld [vmem:[#allocation44_spill] sm:$0xff] }
 0x4fe   :  { %v5388_v48 = vsel %vm1248_vm8, %v2117_v62, %v2216_v41  ;;  %v2130_v55 = vrot.slane %v2129_v7, 4  ;;  %v5708_v20 = vunpack.c.l.bf16 %v5707_v26  ;;  %v5709_v41 = vunpack.c.h.bf16 %v5707_v26  ;;  %v5437_v26 = vld [vmem:[%s5713_s1] sm:$0xff] }
 0x4ff   :  { %v2136_v38 = vsel %vm270_vm0, %v2034_v1, 0.0  ;;  %v2137_v8 = vsel %vm270_vm0, %v2035_v35, 0.0  ;;  %3641 = vmatprep.mubr.msk.f32.mxu0 %vm270_vm0, %v5388_v48  ;;  %3722 = vmatprep.mubr.msk.f32.mxu1 %vm270_vm0, %v5388_v48  ;;  %v2123_v25 = vrot.slane %v2122_v53, 2 }
 0x500   :  { %v1967_v27 = vpop.permute.xlu1 %1966  ;;  %v1972_v2 = vpop.permute.xlu0 %1971  ;;  %v2138_v57 = vadd.f32 %v2137_v8, %v2136_v38  ;;  %v2131_v0 = vadd.f32 %v2130_v55, %v2129_v7 }
 0x501   :  { %v2036_v31 = vmul.f32 %v5699_v51, %v1967_v27  ;;  %v2037_v5 = vmul.f32 %v5700_v22, %v1972_v2  ;;  %v5710_v2 = vld [vmem:[#allocation45_spill] sm:$0xff]  ;;  %v2124_v22 = vadd.f32 %v2123_v25, %v2122_v53  ;;  %v5452_v25 = vld [vmem:[%s5713_s1 + $0x8] sm:$0xff] }
 0x502   :  { %v2139_v23 = vrot.slane %v2138_v57, 4  ;;  %v2132_v10 = vrot.slane %v2131_v0, 2  ;;  %v5712_v51 = vunpack.c.h.bf16 %v5710_v2 }
 0x503   :  { %v2145_v28 = vsel %vm270_vm0, %v2036_v31, 0.0  ;;  %v2146_v4 = vsel %vm270_vm0, %v2037_v5, 0.0 }
 0x504   :  { %v2147_v56 = vadd.f32 %v2146_v4, %v2145_v28  ;;  %v1977_v13 = vpop.permute.xlu1 %1976  ;;  %v1982_v36 = vpop.permute.xlu0 %1981  ;;  %v2140_v33 = vadd.f32 %v2139_v23, %v2138_v57  ;;  %v2133_v12 = vadd.f32 %v2132_v10, %v2131_v0  ;;  %v5711_v57 = vunpack.c.l.bf16 %v5710_v2  ;;  %v2395_v10 = vld [vmem:[#allocation13] sm:$0xff] }
 0x505   :  { %v2038_v60 = vmul.f32 %v5702_v46, %v1977_v13  ;;  %v2039_v14 = vmul.f32 %v5703_v24, %v1982_v36 }
 0x506   :  { %v2148_v32 = vrot.slane %v2147_v56, 4  ;;  %v2141_v63 = vrot.slane %v2140_v33, 2  ;;  %v2134_v13 = vrot.slane %v2133_v12, 1 }
 0x507   :  { %v2154_v59 = vsel %vm270_vm0, %v2038_v60, 0.0  ;;  %v2155_v6 = vsel %vm270_vm0, %v2039_v14, 0.0  ;;  %v2125_v60 = vrot.slane %v2124_v22, 1 }
 0x508   :  { %v2156_v42 = vadd.f32 %v2155_v6, %v2154_v59  ;;  %v1987_v16 = vpop.permute.xlu1 %1986  ;;  %v1992_v58 = vpop.permute.xlu0 %1991  ;;  %v2149_v37 = vadd.f32 %v2148_v32, %v2147_v56  ;;  %v2142_v27 = vadd.f32 %v2141_v63, %v2140_v33  ;;  %v2135_v59 = vadd.f32 %v2134_v13, %v2133_v12  ;;  %v2497_v12 = vld [vmem:[#allocation11 + $0x38] sm:$0xff]  ;;  %v2925_v13 = vld [vmem:[#allocation13 + $0x48] sm:$0xff] }
 0x509   :  { %v2040_v19 = vmul.f32 %v5705_v3, %v1987_v16  ;;  %v2041_v40 = vmul.f32 %v5706_v39, %v1992_v58  ;;  %v2126_v58 = vadd.f32 %v2125_v60, %v2124_v22  ;;  %v2760_v22 = vld [vmem:[#allocation11 + $0x48] sm:$0xff]  ;;  %v3026_v60 = vld [vmem:[%s5562_s12 + $0x8] sm:$0xff] }
 0x50a   :  { %v2157_v49 = vrot.slane %v2156_v42, 4  ;;  %v2150_v61 = vrot.slane %v2149_v37, 2  ;;  %v2143_v46 = vrot.slane %v2142_v27, 1 }
 0x50b   :  { %v2163_v45 = vsel %vm270_vm0, %v2040_v19, 0.0  ;;  %v2164_v54 = vsel %vm270_vm0, %v2041_v40, 0.0  ;;  %v2218_v39 = vsel %vm1236_vm2, %v2135_v59, %v2126_v58  ;;  %v5503_v59 = vld [vmem:[%s5564_s14] sm:$0xff]  ;;  %v3359_v58 = vld [vmem:[#allocation16] ss:$0 sm:$0xff] }
 0x50c   :  { %v2158_v21 = vadd.f32 %v2157_v49, %v2156_v42  ;;  %v2165_v17 = vadd.f32 %v2164_v54, %v2163_v45  ;;  %v1997_v52 = vpop.permute.xlu1 %1996  ;;  %v2002_v9 = vpop.permute.xlu0 %2001  ;;  %v2151_v5 = vadd.f32 %v2150_v61, %v2149_v37  ;;  %v2144_v16 = vadd.f32 %v2143_v46, %v2142_v27  ;;  %v2660_v27 = vld [vmem:[#allocation13 + $0x28] sm:$0xff] }
 0x50d   :  { %v2042_v62 = vmul.f32 %v5708_v20, %v1997_v52  ;;  %v2043_v18 = vmul.f32 %v5709_v41, %v2002_v9  ;;  %v2397_v41 = vld [vmem:[#allocation13 + $0x10] sm:$0xff] }
 0x50e   :  { %v2166_v47 = vrot.slane %v2165_v17, 4  ;;  %v2159_v1 = vrot.slane %v2158_v21, 2  ;;  %v2152_v24 = vrot.slane %v2151_v5, 1  ;;  %v2219_v37 = vsel %vm1238_vm3, %v2144_v16, %v2218_v39 }
 0x50f   :  { %v2172_v30 = vsel %vm270_vm0, %v2042_v62, 0.0  ;;  %v2173_v35 = vsel %vm270_vm0, %v2043_v18, 0.0  ;;  %v2398_v18 = vld [vmem:[#allocation13 + $0x18] sm:$0xff] }
 0x510   :  { %v2167_v11 = vadd.f32 %v2166_v47, %v2165_v17  ;;  %v2174_v38 = vadd.f32 %v2173_v35, %v2172_v30  ;;  %v2007_v8 = vpop.permute.xlu1 %2006  ;;  %v2012_v7 = vpop.permute.xlu0 %2011  ;;  %v2160_v4 = vadd.f32 %v2159_v1, %v2158_v21  ;;  %v2153_v33 = vadd.f32 %v2152_v24, %v2151_v5  ;;  %v2396_v21 = vld [vmem:[#allocation13 + $0x8] sm:$0xff]  ;;  %v2494_v47 = vld [vmem:[#allocation11 + $0x20] sm:$0xff]  ;;  %v5456_v30 = vld [vmem:[#allocation2] sm:$0xff] }
 0x511   :  { %v2044_v29 = vmul.f32 %v5711_v57, %v2007_v8  ;;  %v2045_v31 = vmul.f32 %v5712_v51, %v2012_v7  ;;  %v3765_v20 = vpack.c.bf16 %v2396_v21, %v2395_v10  ;;  %v3769_v61 = vpack.c.bf16 %v2398_v18, %v2397_v41  ;;  %v2495_v1 = vld [vmem:[#allocation11 + $0x28] sm:$0xff]  ;;  %v2496_v35 = vld [vmem:[#allocation11 + $0x30] sm:$0xff]  ;;  %v2659_v7 = vld [vmem:[#allocation13 + $0x20] sm:$0xff] }
 0x512   :  { %v2168_v15 = vrot.slane %v2167_v11, 2  ;;  %v2175_v28 = vrot.slane %v2174_v38, 4  ;;  %v2161_v32 = vrot.slane %v2160_v4, 1  ;;  %v2220_v45 = vsel %vm1240_vm4, %v2153_v33, %v2219_v37  ;;  %v2492_v8 = vld [vmem:[#allocation10 + $0x8] sm:$0xff]  ;;  %v3027_v24 = vld [vmem:[%s5562_s12 + $0x10] sm:$0xff] }
 0x513   :  { %v2181_v55 = vsel %vm270_vm0, %v2044_v29, 0.0  ;;  %v2182_v56 = vsel %vm270_vm0, %v2045_v31, 0.0  ;;  %v3781_v2 = vpack.c.bf16 %v2660_v27, %v2659_v7  ;;  %v2661_v57 = vld [vmem:[#allocation13 + $0x30] sm:$0xff]  ;;  %v2662_v29 = vld [vmem:[#allocation13 + $0x38] sm:$0xff]  ;;  %v2759_v31 = vld [vmem:[#allocation11 + $0x40] sm:$0xff] }
 0x514   :  { %v2169_v36 = vadd.f32 %v2168_v15, %v2167_v11  ;;  %v2176_v23 = vadd.f32 %v2175_v28, %v2174_v38  ;;  %v2183_v50 = vadd.f32 %v2182_v56, %v2181_v55  ;;  %v2162_v19 = vadd.f32 %v2161_v32, %v2160_v4  ;;  %v5460_v38 = vld [vmem:[#allocation2 + $0x8] sm:$0xff]  ;;  %v2761_v15 = vld [vmem:[#allocation11 + $0x50] sm:$0xff]  ;;  %v3375_v18 = vld [vmem:[#allocation16 + $0x2] ss:$0 sm:$0xff] }
 0x515   :  { %v3777_v11 = vpack.c.bf16 %v2497_v12, %v2496_v35  ;;  %v3785_v51 = vpack.c.bf16 %v2662_v29, %v2661_v57  ;;  %v3789_v5 = vpack.c.bf16 %v2760_v22, %v2759_v31  ;;  %v2762_v28 = vld [vmem:[#allocation11 + $0x58] sm:$0xff]  ;;  %v2924_v56 = vld [vmem:[#allocation13 + $0x40] sm:$0xff] }
 0x516   :  { %v2177_v14 = vrot.slane %v2176_v23, 2  ;;  %v2184_v44 = vrot.slane %v2183_v50, 4  ;;  %v2170_v6 = vrot.slane %v2169_v36, 1  ;;  %v2221_v17 = vsel %vm1242_vm5, %v2162_v19, %v2220_v45  ;;  %v2757_v55 = vld [vmem:[#allocation10 + $0x10] sm:$0xff]  ;;  %v3367_v45 = vld [vmem:[#allocation16 + $0x1] ss:$0 sm:$0xff] }
 0x517   :  { %v3793_v4 = vpack.c.bf16 %v2762_v28, %v2761_v15 }
 0x518   :  { %v2178_v0 = vadd.f32 %v2177_v14, %v2176_v23  ;;  %v2185_v42 = vadd.f32 %v2184_v44, %v2183_v50  ;;  %v2171_v40 = vadd.f32 %v2170_v6, %v2169_v36  ;;  %v3797_v36 = vpack.c.bf16 %v2925_v13, %v2924_v56  ;;  %v2926_v23 = vld [vmem:[#allocation13 + $0x50] sm:$0xff]  ;;  %v2927_v50 = vld [vmem:[#allocation13 + $0x58] sm:$0xff]  ;;  %v3028_v44 = vld [vmem:[%s5562_s12 + $0x18] sm:$0xff] }
 0x519   :  { %v3801_v46 = vpack.c.bf16 %v2927_v50, %v2926_v23  ;;  %v3817_v32 = vpack.c.bf16 %v3028_v44, %v3027_v24 }
 0x51a   :  { %v2179_v43 = vrot.slane %v2178_v0, 1  ;;  %v2186_v3 = vrot.slane %v2185_v42, 2  ;;  %v2222_v9 = vsel %vm1244_vm6, %v2171_v40, %v2221_v17 }
 0x51c   :  { %v2187_v53 = vadd.f32 %v2186_v3, %v2185_v42  ;;  %v2180_v49 = vadd.f32 %v2179_v43, %v2178_v0  ;;  %v3358_v42 = vld [vmem:[#allocation14] ss:$0 sm:$0xff] }
 0x51e   :  { %v2188_v54 = vrot.slane %v2187_v53, 1  ;;  %v2223_v63 = vsel %vm1246_vm7, %v2180_v49, %v2222_v9 }
 0x520   :  { %v2189_v52 = vadd.f32 %v2188_v54, %v2187_v53  ;;  %v3366_v53 = vld [vmem:[#allocation14 + $0x1] ss:$0 sm:$0xff] }
 0x522   :  { %v5440_v62 = vsel %vm1248_vm8, %v2189_v52, %v2223_v63 }
 0x523   :  { %3642 = vmatmul.mubr.msk.f32.vlgmr.msra.gmra.mrb[6].mxu0 %vm270_vm0, %v5440_v62  ;;  %3723 = vmatmul.mubr.msk.f32.vlgmr.msra.gmra.mrb[28].mxu1 %vm270_vm0, %v5440_v62 }
 0x524   :  { %3645 = vmatpush3.msra.mxu0 %v5316_v34  ;;  %3646 = vmatprep.mubr.msk.f32.mxu0 %vm2304_vm10, %v5437_v26  ;;  %v3773_v34 = vpack.c.bf16 %v2495_v1, %v2494_v47  ;;  %v3374_v47 = vld [vmem:[#allocation14 + $0x2] ss:$0 sm:$0xff] }
 0x525   :  { %3766 = vmatprep.subr.bf16.mxu0 %v3765_v20 }
 0x52b   :  { %3647 = vmatmul.mubr.msk.f32.vlgmr.msra.gmra.mrb[6].mxu0 %vm2304_vm10, %v5452_v25 }
 0x52c   :  { %3768 = vmatpush3.bf16.msra.mxu0 %v3765_v20  ;;  %3657 = vmatprep.mubr.msk.f32.mxu0 %vm270_vm0, %v5456_v30 }
 0x52d   :  { %3770 = vmatprep.subr.bf16.mxu0 %v3769_v61 }
 0x530   :  { %3772 = vmatpush3.bf16.msra.mxu0 %v3769_v61 }
 0x531   :  { %3774 = vmatprep.subr.bf16.mxu0 %v3773_v34 }
 0x533   :  { %3658 = vmatmul.mubr.msk.f32.vlgmr.msra.gmra.mrb[6].mxu0 %vm270_vm0, %v5460_v38 }
 0x534   :  { %3776 = vmatpush3.bf16.msra.mxu0 %v3773_v34  ;;  %3668 = vmatprep.mubr.msk.f32.mxu0 %vm270_vm0, %v5388_v48 }
 0x535   :  { %3778 = vmatprep.subr.bf16.mxu0 %v3777_v11 }
 0x538   :  { %3780 = vmatpush3.bf16.msra.mxu0 %v3777_v11 }
 0x539   :  { %3671 = vmatprep.subr.mxu0 %v2492_v8 }
 0x53b   :  { %3669 = vmatmul.mubr.msk.f32.vlgmr.msra.gmra.mrb[8].mxu0 %vm270_vm0, %v5440_v62 }
 0x53c   :  { %3672 = vmatpush3.msra.mxu0 %v2492_v8  ;;  %3673 = vmatprep.mubr.msk.f32.mxu0 %vm2304_vm10, %v5437_v26 }
 0x53d   :  { %3782 = vmatprep.subr.bf16.mxu0 %v3781_v2 }
 0x543   :  { %3674 = vmatmul.mubr.msk.f32.vlgmr.msra.gmra.mrb[8].mxu0 %vm2304_vm10, %v5452_v25 }
 0x544   :  { %3784 = vmatpush3.bf16.msra.mxu0 %v3781_v2  ;;  %3684 = vmatprep.mubr.msk.f32.mxu0 %vm270_vm0, %v5456_v30 }
 0x545   :  { %3786 = vmatprep.subr.bf16.mxu0 %v3785_v51 }
 0x548   :  { %3788 = vmatpush3.bf16.msra.mxu0 %v3785_v51 }
 0x549   :  { %3790 = vmatprep.subr.bf16.mxu0 %v3789_v5 }
 0x54b   :  { %3685 = vmatmul.mubr.msk.f32.vlgmr.msra.gmra.mrb[8].mxu0 %vm270_vm0, %v5460_v38 }
 0x54c   :  { %3792 = vmatpush3.bf16.msra.mxu0 %v3789_v5  ;;  %3695 = vmatprep.mubr.msk.f32.mxu0 %vm270_vm0, %v5388_v48  ;;  %v3025_v48 = vld [vmem:[%s5562_s12] sm:$0xff]  ;;  %s4313_s12 = smov [#allocation20]  }
 0x54d   :  { %3794 = vmatprep.subr.bf16.mxu0 %v3793_v4  ;;  %v3813_v14 = vpack.c.bf16 %v3026_v60, %v3025_v48  ;;  %s3297_s14 = sshll.u32 %s4313_s12, 4  ;;  %s3298_s14 = int_to_ptr.vmem [resolvable:$true] %s3297_s14 }
 0x54e   :  { %s4235_s28 = scalar_lea.vmem %s3298_s14, 256  ;;  %p4240_p11 = scmp.lt.s32.totalorder %s3298_s14, %s3298_s14 }
 0x54f   :  { %3814 = vmatprep.subr.bf16.mxu1 %v3813_v14  ;;  %p4236_p10 = scmp.ne.s32.totalorder %s3298_s14, %s4235_s28  ;;  %p4241_p12 = scmp.lt.s32.totalorder %s4235_s28, %s4235_s28 }
 0x550   :  { %3796 = vmatpush3.bf16.msra.mxu0 %v3793_v4  ;;  %3816 = vmatpush3.bf16.msra.mxu1 %v3813_v14 }
 0x551   :  { %3698 = vmatprep.subr.mxu0 %v2757_v55  ;;  %3818 = vmatprep.subr.bf16.mxu1 %v3817_v32  ;;  %p4242_p13 = por %p4241_p12, %p4240_p11 }
 0x553   :  { %3696 = vmatmul.mubr.msk.f32.vlgmr.msra.gmra.mrb[10].mxu0 %vm270_vm0, %v5440_v62  ;;  %p4243_p0 = pnand %p4242_p13, %p4236_p10 }
 0x554   :  { %3699 = vmatpush3.msra.mxu0 %v2757_v55  ;;  %3700 = vmatprep.mubr.msk.f32.mxu0 %vm2304_vm10, %v5437_v26 }
 0x555   :  { %3798 = vmatprep.subr.bf16.mxu0 %v3797_v36  ;;  %3820 = vmatpush3.bf16.msra.mxu1 %v3817_v32 }
 0x556   :  { %3736 = vmatprep.subr.mxu1 %v5503_v59 }
 0x55b   :  { %3701 = vmatmul.mubr.msk.f32.vlgmr.msra.gmra.mrb[10].mxu0 %vm2304_vm10, %v5452_v25 }
 0x55c   :  { %3800 = vmatpush3.bf16.msra.mxu0 %v3797_v36  ;;  %3711 = vmatprep.mubr.msk.f32.mxu0 %vm270_vm0, %v5456_v30 }
 0x55d   :  { %3802 = vmatprep.subr.bf16.mxu0 %v3801_v46 }
 0x560   :  { %3804 = vmatpush3.bf16.msra.mxu0 %v3801_v46 }
 0x563   :  { %3712 = vmatmul.mubr.msk.f32.vlgmr.msra.gmra.mrb[12].mxu0 %vm270_vm0, %v5460_v38 }
 0x606   :  { %v3659_v6 = vpop.f32.mrb[6].mxu0 }
 0x607   :  { %v2472_v0 = vpop.f32.mrb[7].mxu0  ;;  %v3825_v16 = vadd.f32 %v3659_v6, %v3358_v42 }
 0x608   :  { %v3827_v33 = vadd.f32 %v3358_v42, %v2472_v0 }
 0x609   :  { %v3826_v43 = vadd.f32 %v3825_v16, %v3359_v58 }
 0x60a   :  { %v3828_v19 = vadd.f32 %v3827_v33, %v3359_v58 }
 0x60b   :  { %v2484_v40 = vmul.f32 0.5, %v3826_v43 }
 0x60c   :  { %v2483_v37 = vmul.f32 0.5, %v3828_v19 }
 0x60d   :  { %4001 = vtanh.f32 %v2484_v40 }
 0x60e   :  { %4003 = vtanh.f32 %v2483_v37 }
 0x617   :  { %v4002_v20 = vpop.eup %4001 }
 0x618   :  { %v4004_v62 = vpop.eup %4003  ;;  %v2488_v41 = vadd.f32 1.0, %v4002_v20 }
 0x619   :  { %v2487_v61 = vadd.f32 1.0, %v4004_v62 }
 0x61a   :  { %v2490_v34 = vmul.f32 0.5, %v2488_v41 }
 0x61b   :  { %v2489_v11 = vmul.f32 0.5, %v2487_v61 }
 0x61e   :  { %v3686_v3 = vpop.f32.mrb[8].mxu0 }
 0x61f   :  { %v2737_v39 = vpop.f32.mrb[9].mxu0  ;;  %v3829_v49 = vadd.f32 %v3686_v3, %v3366_v53 }
 0x620   :  { %v3831_v54 = vadd.f32 %v3366_v53, %v2737_v39 }
 0x621   :  { %v3830_v10 = vadd.f32 %v3829_v49, %v3367_v45 }
 0x622   :  { %v3832_v21 = vadd.f32 %v3831_v54, %v3367_v45 }
 0x623   :  { %v2749_v17 = vmul.f32 0.5, %v3830_v10 }
 0x624   :  { %v2748_v52 = vmul.f32 0.5, %v3832_v21 }
 0x625   :  { %4005 = vtanh.f32 %v2749_v17 }
 0x626   :  { %4007 = vtanh.f32 %v2748_v52 }
 0x62e   :  { %v3702_v9 = vpop.f32.mrb[10].mxu0 }
 0x62f   :  { %v2904_v63 = vpop.f32.mrb[11].mxu0  ;;  %v2922_v7 = vadd.f32 %v3702_v9, %v3374_v47  ;;  %v4006_v29 = vpop.eup %4005 }
 0x630   :  { %v2921_v2 = vadd.f32 %v3374_v47, %v2904_v63  ;;  %v4008_v31 = vpop.eup %4007  ;;  %v2753_v5 = vadd.f32 1.0, %v4006_v29 }
 0x631   :  { %v2752_v15 = vadd.f32 1.0, %v4008_v31 }
 0x632   :  { %v2755_v28 = vmul.f32 0.5, %v2753_v5 }
 0x633   :  { %v2754_v4 = vmul.f32 0.5, %v2752_v15 }
 0x634   :  { %v3018_v55 = vsub.f32 1.0, %v2755_v28  ;;  %v3022_v23 = vmul.f32 %v5460_v38, %v2755_v28 }
 0x635   :  { %v3017_v13 = vsub.f32 1.0, %v2754_v4  ;;  %v3021_v46 = vmul.f32 %v5456_v30, %v2754_v4 }
 0x636   :  { %v3713_v1 = vpop.f32.mrb[12].mxu0 }
 0x637   :  { %v3008_v35 = vadd.f32 %v3713_v1, %v3375_v18  ;;  %v3002_v12 = vpop.f32.mrb[13].mxu0 }
 0x638   :  { %v3003_v8 = vadd.f32 %v3375_v18, %v3002_v12 }
 0x639   :  { %v3012_v27 = vmul.f32 %v3008_v35, %v2490_v34 }
 0x63a   :  { %v3011_v57 = vmul.f32 %v3003_v8, %v2489_v11 }
 0x63b   :  { %v3014_v51 = vadd.f32 %v3012_v27, %v2922_v7 }
 0x63c   :  { %v3013_v22 = vadd.f32 %v3011_v57, %v2921_v2 }
 0x63d   :  { %4009 = vtanh.f32 %v3014_v51 }
 0x63e   :  { %4011 = vtanh.f32 %v3013_v22 }
 0x647   :  { %v4010_v56 = vpop.eup %4009 }
 0x648   :  { %v4012_v36 = vpop.eup %4011  ;;  %v3020_v50 = vmul.f32 %v4010_v56, %v3018_v55 }
 0x649   :  { %v3019_v48 = vmul.f32 %v4012_v36, %v3017_v13 }
 0x64a   :  { %v3024_v60 = vadd.f32 %v3022_v23, %v3020_v50 }
 0x64b   :  { %v3023_v24 = vadd.f32 %v3021_v46, %v3019_v48 }
 0x64c   :  { %3279 = vst.msk [vmem:[#allocation20 + $0x8] sm:$0xff] %vm270_vm0, %v3024_v60 }
 0x64d   :  { %3733 = vmatprep.mubr.msk.f32.mxu1 %vm270_vm0, %v3023_v24  ;;  %3278 = vst.msk [vmem:[#allocation20] sm:$0xff] %vm270_vm0, %v3023_v24 }
 0x64e   :  { %3734 = vmatmul.mubr.msk.f32.vlgmr.msra.gmra.mrb[28].mxu1 %vm270_vm0, %v3024_v60 }
 0x64f   :  { %3737 = vmatpush3.msra.mxu1 %v5503_v59  ;;  %3738 = vmatprep.mubr.msk.f32.mxu1 %vm2304_vm10, %v5437_v26 }
 0x656   :  { %3739 = vmatmul.mubr.msk.f32.vlgmr.msra.gmra.mrb[28].mxu1 %vm2304_vm10, %v5452_v25 }
 0x657   :  { %4246 = shalt.err (!%p4243_p0)
}
 0x658   :  { %s4247_s13 = scalar_lea.hbm %s5567_s17, 256 }
 0x659   :  { %p4248_p1 = scmp.ne.s32.totalorder %s5567_s17, %s4247_s13  ;;  %p4251_p2 = scmp.lt.u32.totalorder %s4247_s13, %s5567_s17 }
 0x65b   :  { %p4253_p3 = pnand %p4251_p2, %p4248_p1 }
 0x65d   :  { %4256 = shalt.err (!%p4253_p3)
}
 0x65e   :  { %3303 = dma.vmem_to_hbm [thread:$0]  %s3298_s14, 256, %s5567_s17, [#allocation21], %s5642_s23, %s5642_s23, %s4302_s19  }
 0x65f   :  { %v3384_v26 = vld [vmem:[%s5565_s15] ss:$0 sm:$0xff]  ;;  %s4314_s24 = smov [#allocation19]  }
 0x660   :  { %s3285_s22 = sshll.u32 %s4314_s24, 4  ;;  %s3286_s22 = int_to_ptr.vmem [resolvable:$true] %s3285_s22 }
 0x661   :  { %s4257_s7 = scalar_lea.vmem %s3286_s22, 256  ;;  %p4262_p5 = scmp.lt.s32.totalorder %s3286_s22, %s3286_s22 }
 0x662   :  { %p4258_p4 = scmp.ne.s32.totalorder %s3286_s22, %s4257_s7  ;;  %p4263_p6 = scmp.lt.s32.totalorder %s4257_s7, %s4257_s7 }
 0x664   :  { %p4264_p7 = por %p4263_p6, %p4262_p5 }
 0x666   :  { %p4265_p8 = pnand %p4264_p7, %p4258_p4 }
 0x729   :  { %v3740_v25 = vpop.f32.mrb[28].mxu1 }
 0x72a   :  { %v3275_v30 = vadd.f32 %v3740_v25, %v3384_v26  ;;  %v3256_v38 = vpop.f32.mrb[29].mxu1 }
 0x72b   :  { %v3274_v14 = vadd.f32 %v3384_v26, %v3256_v38 }
 0x72c   :  { %3277 = vst [vmem:[#allocation19 + $0x8] sm:$0xff] %v3275_v30 }
 0x72d   :  { %3276 = vst [vmem:[#allocation19] sm:$0xff] %v3274_v14 }
 0x72e   :  { %4268 = shalt.err (!%p4265_p8)
}
 0x72f   :  { %s4269_s15 = scalar_lea.hbm %s5566_s16, 256 }
 0x730   :  { %p4270_p9 = scmp.ne.s32.totalorder %s5566_s16, %s4269_s15  ;;  %p4273_p10 = scmp.lt.u32.totalorder %s4269_s15, %s5566_s16 }
 0x732   :  { %p4275_p11 = pnand %p4273_p10, %p4270_p9 }
 0x734   :  { %4278 = shalt.err (!%p4275_p11)
}
 0x735   :  { %3291 = dma.vmem_to_hbm [thread:$0]  %s3286_s22, 256, %s5566_s16, [#allocation4], %s5642_s23, %s5642_s23, %s4302_s19  }
 0x736   :  { %4291 = dma.done.wait [#allocation4], 256  }
 0x737   :  { %4292 = vsyncadd [#allocation4], 4294967040 }
 0x738   :  { %4293 = dma.done.wait [#allocation21], 256  }
 0x739   :  { %4294 = vsyncadd [#allocation21], 4294967040 }
 0x73a   :  { %3310 = vsyncpa [#allocation3], 1 }
 0x73b   :  { %3311 = vsyncpa [#allocation6], 1 }
 0x73c   :  { %3312 = vsyncpa [#allocation9], 1 }
 0x73d   :  { %3313 = vsyncpa [#allocation12], 1 }
 0x73e   :  { %3314 = vsyncpa [#allocation15], 1 }
 0x73f   :  { %3315 = vsyncpa [#allocation18], 1 }
 0x740   :  { %3316 = vsyncpa [#allocation4], 1 }
 0x741   :  { %3317 = vsyncpa [#allocation21], 1 }

</bundles_post_ra>
